<compile_context>
chip_gen: v7x
topology: tpu7x:2x2x1
jax: 0.10.0
libtpu: 0.0.40
codegen_flags: <defaults>
</compile_context>

<pallas_src>
import functools

import jax
import jax.numpy as jnp
import numpy as np
from jax.experimental import pallas as pl
from jax.experimental.pallas import tpu as pltpu

# Hyper-params consistent with the module's __init__
VOCAB = 20
EMB_DIM = 16      # input_dim
HIDDEN = 32       # hidden_dim
OUT_DIM = 2       # output_dim
NUM_LAYERS = 2
BATCH = 2
SEQ_LEN = 8       # padded sequence length T
FC_PAD = 128      # lane-dense width for the FC head (OUT_DIM zero-padded to 128)


# ----------------------------- fused Pallas kernel ---------------------------

def _fused_bilstm_kernel(*refs, T, BP, H, num_layers):
    """Fused bidirectional multi-layer LSTM + FC head (single invocation, no grid).

    refs = (x2, mask, [wx, whh, b] * num_layers, fc_w, fc_b,   # inputs
            out,                                               # output
            gx_scr)                                            # VMEM scratch

    Packed layouts (G = 2H = both directions side by side):
      state h, c            : (BP, G)  = [h_fwd | h_bwd]
      gates                 : (BP, 4G) = [i | f | o | g], each gate = [fwd | bwd];
                              i/f/o columns are pre-scaled by 0.5 host-side so
                              sigmoid(z) == 0.5*tanh(col) + 0.5 with ONE tanh pass.
      x2[s]  (layer-0 input): [x[s] | x[T-1-s]]                   (step-aligned)
      layer>=1 input at s   : [fwd(s) | bwd(T-1-s) | fwd(T-1-s) | bwd(s)]
                              (W_ih rows permuted host-side to match)
      mask[s]               : [(s < len) * H | (T-1-s < len) * H]
    """
    x2_ref, mask_ref = refs[0], refs[1]
    layer_refs = [refs[2 + 3 * l: 5 + 3 * l] for l in range(num_layers)]
    fcw_ref = refs[2 + 3 * num_layers]
    fcb_ref = refs[3 + 3 * num_layers]
    out_ref = refs[4 + 3 * num_layers]
    gx_scr = refs[5 + 3 * num_layers]

    G = 2 * H          # packed state width  [fwd | bwd]
    SGW = 3 * G        # lanes of the three sigmoid gates (i, f, o)

    def run_layer(x_in_bf16, wx_ref, whh_ref, b_ref, collect):
        # Hoisted input projection for all T steps and both directions at once:
        # one (T*BP, Din) @ (Din, 8H) bf16 MXU matmul with f32 accumulation.
        gx_scr[...] = (jnp.dot(x_in_bf16, wx_ref[...],
                               preferred_element_type=jnp.float32) + b_ref[...])

        # TODO(synk): whh is loop-invariant; if a bundle dump shows Mosaic re-pushing
        # it to MXU staging each unrolled step, switch to explicit
        # pltpu.matmul_push_rhs / matmul_acc_lhs / matmul_pop.
        whh = whh_ref[...]                            # (G, 8H) bf16, block-diagonal
        h = jnp.zeros((BP, G), jnp.float32)
        c = jnp.zeros((BP, G), jnp.float32)
        step_outs = []
        for s in range(T):                            # static T -> fully unrolled
            rs = s * BP                               # rows of step s
            gates = gx_scr[rs:rs + BP, :] + jnp.dot(
                h.astype(jnp.bfloat16), whh, preferred_element_type=jnp.float32)
            # Single EUP pass: i/f/o columns hold z/2 (host-side fold), g holds z.
            t = jnp.tanh(gates)
            sig = 0.5 * t[:, :SGW] + 0.5
            i_g = sig[:, 0 * G:1 * G]
            f_g = sig[:, 1 * G:2 * G]
            o_g = sig[:, 2 * G:3 * G]
            g_g = t[:, SGW:]
            c_new = f_g * c + i_g * g_g
            h_new = o_g * jnp.tanh(c_new)
            m = mask_ref[rs:rs + BP, :]               # (BP, G) 0/1 validity
            valid = m > 0.5
            h = jnp.where(valid, h_new, h)            # packed-seq: freeze past length
            c = jnp.where(valid, c_new, c)
            if collect:
                # zero-filled (pad_packed_sequence) step output, kept as a value;
                # NO stores inside the serial recurrence loop.
                step_outs.append(m * h_new)           # [fwd(s) | bwd(T-1-s)]
        return h, step_outs

    x_in = x2_ref[...]                                # layer-0 input, already bf16
    h_final = None
    for l, (wx_ref, whh_ref, b_ref) in enumerate(layer_refs):
        last = (l == num_layers - 1)
        h_final, step_outs = run_layer(x_in, wx_ref, whh_ref, b_ref, collect=not last)
        if not last:
            # Assemble the next layer's step-aligned packed input as one bulk value
            # after the loop: row block s = [step_outs[s] | step_outs[T-1-s]]
            #                            = [fwd(s) | bwd(T-1-s) | fwd(T-1-s) | bwd(s)].
            nxt = jnp.concatenate(
                [jnp.concatenate([step_outs[s], step_outs[T - 1 - s]], axis=1)
                 for s in range(T)], axis=0)          # (T*BP, 2G)
            x_in = nxt.astype(jnp.bfloat16)

    # Final hidden carry == [out_forward | out_reverse] of the reference readout.
    # TODO(synk): nn.Dropout(p=0.5) is stochastic in training mode; eval-mode identity.
    out_ref[...] = (jnp.dot(h_final.astype(jnp.bfloat16), fcw_ref[...],
                            preferred_element_type=jnp.float32)
                    + fcb_ref[...]).astype(out_ref.dtype)


# ------------------------ host-side weight packing (glue) --------------------

_GATE_SRC = (0, 1, 3, 2)   # packed gate order [i, f, o, g] <- torch/ref order [i, f, g, o]
_NUM_SIG = 3               # first 3 packed gates are sigmoid gates (pre-scaled by 0.5)


def _gate_cols(w4h, direction, H):
    """(K, 4H) ref-ordered [i f g o] columns -> (K, 8H) packed columns
    [i_f i_b | f_f f_b | o_f o_b | g_f g_b] for one direction (0=fwd, 1=bwd).
    Sigmoid-gate columns are pre-scaled by 0.5 (folds the tanh-sigmoid input scale)."""
    K = w4h.shape[0]
    out = jnp.zeros((K, 8 * H), jnp.float32)
    for k, src in enumerate(_GATE_SRC):
        col = w4h[:, src * H:(src + 1) * H]
        if k < _NUM_SIG:
            col = 0.5 * col
        c0 = k * 2 * H + direction * H
        out = out.at[:, c0:c0 + H].set(col)
    return out


def _pack_layer(layer, H, first):
    fw, bw = layer["fwd"], layer["bwd"]
    if first:
        # layer-0 packed input rows: [ x(s) | x(T-1-s) ]
        wx = jnp.concatenate([_gate_cols(fw["w_ih"], 0, H),
                              _gate_cols(bw["w_ih"], 1, H)], axis=0)
    else:
        # layer>=1 packed input rows: [ fwd(s) | bwd(T-1-s) | fwd(T-1-s) | bwd(s) ]
        wx = jnp.concatenate([_gate_cols(fw["w_ih"][:H], 0, H),
                              _gate_cols(bw["w_ih"][H:], 1, H),
                              _gate_cols(bw["w_ih"][:H], 1, H),
                              _gate_cols(fw["w_ih"][H:], 0, H)], axis=0)
    whh = jnp.concatenate([_gate_cols(fw["w_hh"], 0, H),
                           _gate_cols(bw["w_hh"], 1, H)], axis=0)
    b = _gate_cols(fw["b"], 0, H) + _gate_cols(bw["b"], 1, H)
    # MXU operands in bf16, bias stays f32 (added after f32 accumulation).
    return wx.astype(jnp.bfloat16), whh.astype(jnp.bfloat16), b


# ------------------------------ model wrapper ---------------------------------

def lstm_forward(params, seq, seq_length):
    B, T = seq.shape
    H = HIDDEN
    E = params["emb"].shape[1]
    BP = ((B + 7) // 8) * 8                       # pad batch to full sublane tiles

    emb = params["emb"][seq]                      # (B, T, E) embedding lookup (glue)
    x = jnp.transpose(emb, (1, 0, 2))             # time-major (T, B, E)
    x = jnp.pad(x, ((0, 0), (0, BP - B), (0, 0)))
    lens = jnp.concatenate([seq_length.astype(jnp.int32),
                            jnp.ones((BP - B,), jnp.int32)])

    # Step-aligned, direction-packed layer-0 input: x2[s] = [x[s] | x[T-1-s]]
    x2 = jnp.concatenate([x, x[::-1]], axis=-1).reshape(T * BP, 2 * E)
    x2 = x2.astype(jnp.bfloat16)

    # Step-aligned validity mask: fwd half = (s < len), bwd half = (T-1-s < len)
    steps = jnp.arange(T, dtype=jnp.int32)
    mf = (steps[:, None] < lens[None, :]).astype(jnp.float32)           # (T, BP)
    mb = ((T - 1 - steps)[:, None] < lens[None, :]).astype(jnp.float32)
    mask = jnp.concatenate(
        [jnp.broadcast_to(mf[:, :, None], (T, BP, H)),
         jnp.broadcast_to(mb[:, :, None], (T, BP, H))],
        axis=-1).reshape(T * BP, 2 * H)

    packed = []
    for l, layer in enumerate(params["layers"]):
        packed.extend(_pack_layer(layer, H, first=(l == 0)))

    # Lane-dense FC head: zero-pad N to 128 so the final matmul/store is unmasked.
    fc_w = jnp.zeros((2 * H, FC_PAD), jnp.float32).at[:, :OUT_DIM].set(params["fc_w"])
    fc_w = fc_w.astype(jnp.bfloat16)
    fc_b = jnp.zeros((1, FC_PAD), jnp.float32).at[:, :OUT_DIM].set(params["fc_b"])

    inputs = (x2, mask, *packed, fc_w, fc_b)

    # Advisory cost estimate (helps XLA schedule around the custom call).
    flops = 0
    for l, layer in enumerate(params["layers"]):
        din = 2 * layer["fwd"]["w_ih"].shape[0]
        flops += 2 * (T * BP) * din * (8 * H)            # hoisted x @ W_ih
        flops += 2 * T * BP * (2 * H) * (8 * H)          # recurrent h @ W_hh
    flops += 2 * BP * (2 * H) * FC_PAD                   # FC head
    transcendentals = len(params["layers"]) * T * BP * (8 * H + 2 * H)
    bytes_accessed = (sum(int(np.prod(a.shape)) * a.dtype.itemsize for a in inputs)
                      + BP * FC_PAD * 4)

    kernel = functools.partial(_fused_bilstm_kernel, T=T, BP=BP, H=H,
                               num_layers=len(params["layers"]))
    vmem_spec = lambda: pl.BlockSpec(memory_space=pltpu.MemorySpace.VMEM)
    # NOTE(v7x): gridless => single TensorCore.  If batch grows beyond one sublane
    # tile, add a leading batch-tile grid axis with dimension_semantics=("parallel",).
    out = pl.pallas_call(
        kernel,
        out_shape=jax.ShapeDtypeStruct((BP, FC_PAD), jnp.float32),
        in_specs=[vmem_spec() for _ in inputs],
        out_specs=vmem_spec(),
        scratch_shapes=[
            pltpu.VMEM((T * BP, 8 * H), jnp.float32),   # gx: hoisted input projection
        ],
        cost_estimate=pl.CostEstimate(flops=int(flops),
                                      transcendentals=int(transcendentals),
                                      bytes_accessed=int(bytes_accessed)),
    )(*inputs)
    return out[:B, :OUT_DIM]


# ------------------------------ pure-JAX reference ----------------------------

def _lstm_dir_ref(x_tbd, lengths, w_ih, w_hh, bias, reverse):
    T, B, _ = x_tbd.shape
    H = w_hh.shape[0]
    h = jnp.zeros((B, H), jnp.float32)
    c = jnp.zeros((B, H), jnp.float32)
    outs = [None] * T
    order = range(T - 1, -1, -1) if reverse else range(T)
    for t in order:
        gates = x_tbd[t] @ w_ih + h @ w_hh + bias
        i_g = jax.nn.sigmoid(gates[:, :H])
        f_g = jax.nn.sigmoid(gates[:, H:2 * H])
        g_g = jnp.tanh(gates[:, 2 * H:3 * H])
        o_g = jax.nn.sigmoid(gates[:, 3 * H:])
        c_new = f_g * c + i_g * g_g
        h_new = o_g * jnp.tanh(c_new)
        valid = (t < lengths)[:, None]
        h = jnp.where(valid, h_new, h)
        c = jnp.where(valid, c_new, c)
        outs[t] = jnp.where(valid, h, 0.0)
    return jnp.stack(outs, axis=0)


def lstm_forward_ref(params, seq, seq_length):
    B, T = seq.shape
    x = jnp.transpose(params["emb"][seq], (1, 0, 2))
    for layer in params["layers"]:
        f = _lstm_dir_ref(x, seq_length, layer["fwd"]["w_ih"],
                          layer["fwd"]["w_hh"], layer["fwd"]["b"], False)
        r = _lstm_dir_ref(x, seq_length, layer["bwd"]["w_ih"],
                          layer["bwd"]["w_hh"], layer["bwd"]["b"], True)
        x = jnp.concatenate([f, r], axis=-1)
    outs = jnp.transpose(x, (1, 0, 2))
    out_forward = outs[jnp.arange(B), seq_length - 1, :HIDDEN]
    out_reverse = outs[:, 0, HIDDEN:]
    final = jnp.concatenate([out_forward, out_reverse], axis=1)
    return final @ params["fc_w"] + params["fc_b"]


# ------------------------------ parameter init --------------------------------

def init_params(key):
    ks = list(jax.random.split(key, 32))
    scale = 1.0 / np.sqrt(HIDDEN)

    def draw(shape, s=scale):
        return jax.random.uniform(ks.pop(), shape, jnp.float32, -s, s)

    emb = jax.random.normal(ks.pop(), (VOCAB, EMB_DIM), jnp.float32) * 0.1
    layers = []
    for l in range(NUM_LAYERS):
        d_in = EMB_DIM if l == 0 else 2 * HIDDEN
        layer = {}
        for d in ("fwd", "bwd"):
            layer[d] = dict(
                w_ih=draw((d_in, 4 * HIDDEN)),                       # transposed vs torch
                w_hh=draw((HIDDEN, 4 * HIDDEN)),
                b=(draw((4 * HIDDEN,)) + draw((4 * HIDDEN,))).reshape(1, 4 * HIDDEN),
            )
        layers.append(layer)
    fc_scale = 1.0 / np.sqrt(2 * HIDDEN)
    fc_w = draw((2 * HIDDEN, OUT_DIM), fc_scale)
    fc_b = draw((OUT_DIM,), fc_scale).reshape(1, OUT_DIM)
    return dict(emb=emb, layers=layers, fc_w=fc_w, fc_b=fc_b)


# ----------------------------------- main --------------------------------------

if __name__ == "__main__":
    key = jax.random.PRNGKey(0)
    k_par, k_seq = jax.random.split(key)
    params = init_params(k_par)

    seq = jax.random.randint(k_seq, (BATCH, SEQ_LEN), 0, VOCAB, dtype=jnp.int32)
    seq_length = jnp.array([SEQ_LEN, 5], dtype=jnp.int32)   # variable lengths (padded)

    out = jax.block_until_ready(jax.jit(lstm_forward)(params, seq, seq_length))
    ref = jax.block_until_ready(lstm_forward_ref(params, seq, seq_length))

    # bf16 MXU operands (f32 accumulation) vs pure-f32 reference -> loosened tolerance.
    np.testing.assert_allclose(np.asarray(out), np.asarray(ref),
                               rtol=3e-2, atol=3e-2)
    assert out.shape == (BATCH, OUT_DIM)
    print("KERNEL_OK")
</pallas_src>

<mosaic_0001>
module attributes {stable_mosaic.version = 11 : i64} {
  func.func @_fused_bilstm_kernel(%arg0: memref<64x32xbf16, #tpu.memory_space<vmem>>, %arg1: memref<64x64xf32, #tpu.memory_space<vmem>>, %arg2: memref<32x256xbf16, #tpu.memory_space<vmem>>, %arg3: memref<64x256xbf16, #tpu.memory_space<vmem>>, %arg4: memref<1x256xf32, #tpu.memory_space<vmem>>, %arg5: memref<128x256xbf16, #tpu.memory_space<vmem>>, %arg6: memref<64x256xbf16, #tpu.memory_space<vmem>>, %arg7: memref<1x256xf32, #tpu.memory_space<vmem>>, %arg8: memref<64x128xbf16, #tpu.memory_space<vmem>>, %arg9: memref<1x128xf32, #tpu.memory_space<vmem>>, %arg10: memref<8x128xf32, #tpu.memory_space<vmem>>, %arg11: memref<64x256xf32, #tpu.memory_space<vmem>>) attributes {dimension_semantics = [], scalar_prefetch = 0 : i64, scratch_operands = 1 : i64, tpu.core_type = #tpu.core_type<tc>} {
    %c0 = arith.constant 0 : index
    %c0_0 = arith.constant 0 : index
    %0 = vector.load %arg0[%c0, %c0_0] : memref<64x32xbf16, #tpu.memory_space<vmem>>, vector<64x32xbf16>
    %c0_1 = arith.constant 0 : index
    %c0_2 = arith.constant 0 : index
    %1 = vector.load %arg2[%c0_1, %c0_2] : memref<32x256xbf16, #tpu.memory_space<vmem>>, vector<32x256xbf16>
    %cst = arith.constant dense<0.000000e+00> : vector<64x256xf32>
    %2 = tpu.matmul %0, %1, %cst {dimension_numbers = #tpu.dot_dimension_numbers<[1], [0], [0], [1], [0, 0, 1, 1], [], []>} : vector<64x32xbf16>, vector<32x256xbf16>, vector<64x256xf32> -> vector<64x256xf32>
    %c0_3 = arith.constant 0 : index
    %c0_4 = arith.constant 0 : index
    %3 = vector.load %arg4[%c0_3, %c0_4] : memref<1x256xf32, #tpu.memory_space<vmem>>, vector<1x256xf32>
    %4 = vector.broadcast %3 : vector<1x256xf32> to vector<64x256xf32>
    %5 = arith.addf %2, %4 : vector<64x256xf32>
    %c0_5 = arith.constant 0 : index
    %c0_6 = arith.constant 0 : index
    %6 = vector.load %arg11[%c0_5, %c0_6] : memref<64x256xf32, #tpu.memory_space<vmem>>, vector<64x256xf32>
    tpu.vector_store %arg11[%c0_5, %c0_6], %5 {strides = array<i32>} : memref<64x256xf32, #tpu.memory_space<vmem>>, vector<64x256xf32>,
    %c0_7 = arith.constant 0 : index
    %c0_8 = arith.constant 0 : index
    %7 = vector.load %arg3[%c0_7, %c0_8] : memref<64x256xbf16, #tpu.memory_space<vmem>>, vector<64x256xbf16>
    %cst_9 = arith.constant 0.000000e+00 : f32
    %8 = vector.broadcast %cst_9 : f32 to vector<8x64xf32>
    %cst_10 = arith.constant 0.000000e+00 : f32
    %9 = vector.broadcast %cst_10 : f32 to vector<8x64xf32>
    %c0_11 = arith.constant 0 : index
    %c0_12 = arith.constant 0 : index
    %10 = vector.load %arg11[%c0_11, %c0_12] : memref<64x256xf32, #tpu.memory_space<vmem>>, vector<8x256xf32>
    %11 = arith.truncf %8 : vector<8x64xf32> to vector<8x64xbf16>
    %cst_13 = arith.constant dense<0.000000e+00> : vector<8x256xf32>
    %12 = tpu.matmul %11, %7, %cst_13 {dimension_numbers = #tpu.dot_dimension_numbers<[1], [0], [0], [1], [0, 0, 1, 1], [], []>} : vector<8x64xbf16>, vector<64x256xbf16>, vector<8x256xf32> -> vector<8x256xf32>
    %13 = arith.addf %10, %12 : vector<8x256xf32>
    %14 = math.tanh %13 : vector<8x256xf32>
    %15 = vector.extract_strided_slice %14 {offsets = [0, 0], sizes = [8, 192], strides = [1, 1]} : vector<8x256xf32> to vector<8x192xf32>
    %cst_14 = arith.constant 5.000000e-01 : f32
    %16 = vector.broadcast %cst_14 : f32 to vector<8x192xf32>
    %17 = arith.mulf %16, %15 : vector<8x192xf32>
    %cst_15 = arith.constant 5.000000e-01 : f32
    %18 = vector.broadcast %cst_15 : f32 to vector<8x192xf32>
    %19 = arith.addf %17, %18 : vector<8x192xf32>
    %20 = vector.extract_strided_slice %19 {offsets = [0, 0], sizes = [8, 64], strides = [1, 1]} : vector<8x192xf32> to vector<8x64xf32>
    %21 = vector.extract_strided_slice %19 {offsets = [0, 64], sizes = [8, 64], strides = [1, 1]} : vector<8x192xf32> to vector<8x64xf32>
    %22 = vector.extract_strided_slice %19 {offsets = [0, 128], sizes = [8, 64], strides = [1, 1]} : vector<8x192xf32> to vector<8x64xf32>
    %23 = vector.extract_strided_slice %14 {offsets = [0, 192], sizes = [8, 64], strides = [1, 1]} : vector<8x256xf32> to vector<8x64xf32>
    %24 = arith.mulf %21, %9 : vector<8x64xf32>
    %25 = arith.mulf %20, %23 : vector<8x64xf32>
    %26 = arith.addf %24, %25 : vector<8x64xf32>
    %27 = math.tanh %26 : vector<8x64xf32>
    %28 = arith.mulf %22, %27 : vector<8x64xf32>
    %c0_16 = arith.constant 0 : index
    %c0_17 = arith.constant 0 : index
    %29 = vector.load %arg1[%c0_16, %c0_17] : memref<64x64xf32, #tpu.memory_space<vmem>>, vector<8x64xf32>
    %cst_18 = arith.constant 5.000000e-01 : f32
    %30 = vector.broadcast %cst_18 : f32 to vector<8x64xf32>
    %31 = arith.cmpf ogt, %29, %30 : vector<8x64xf32>
    %32 = arith.select %31, %28, %8 : vector<8x64xi1>, vector<8x64xf32>
    %33 = arith.select %31, %26, %9 : vector<8x64xi1>, vector<8x64xf32>
    %34 = arith.mulf %29, %28 : vector<8x64xf32>
    %c8 = arith.constant 8 : index
    %c0_19 = arith.constant 0 : index
    %35 = vector.load %arg11[%c8, %c0_19] : memref<64x256xf32, #tpu.memory_space<vmem>>, vector<8x256xf32>
    %36 = arith.truncf %32 : vector<8x64xf32> to vector<8x64xbf16>
    %cst_20 = arith.constant dense<0.000000e+00> : vector<8x256xf32>
    %37 = tpu.matmul %36, %7, %cst_20 {dimension_numbers = #tpu.dot_dimension_numbers<[1], [0], [0], [1], [0, 0, 1, 1], [], []>} : vector<8x64xbf16>, vector<64x256xbf16>, vector<8x256xf32> -> vector<8x256xf32>
    %38 = arith.addf %35, %37 : vector<8x256xf32>
    %39 = math.tanh %38 : vector<8x256xf32>
    %40 = vector.extract_strided_slice %39 {offsets = [0, 0], sizes = [8, 192], strides = [1, 1]} : vector<8x256xf32> to vector<8x192xf32>
    %cst_21 = arith.constant 5.000000e-01 : f32
    %41 = vector.broadcast %cst_21 : f32 to vector<8x192xf32>
    %42 = arith.mulf %41, %40 : vector<8x192xf32>
    %cst_22 = arith.constant 5.000000e-01 : f32
    %43 = vector.broadcast %cst_22 : f32 to vector<8x192xf32>
    %44 = arith.addf %42, %43 : vector<8x192xf32>
    %45 = vector.extract_strided_slice %44 {offsets = [0, 0], sizes = [8, 64], strides = [1, 1]} : vector<8x192xf32> to vector<8x64xf32>
    %46 = vector.extract_strided_slice %44 {offsets = [0, 64], sizes = [8, 64], strides = [1, 1]} : vector<8x192xf32> to vector<8x64xf32>
    %47 = vector.extract_strided_slice %44 {offsets = [0, 128], sizes = [8, 64], strides = [1, 1]} : vector<8x192xf32> to vector<8x64xf32>
    %48 = vector.extract_strided_slice %39 {offsets = [0, 192], sizes = [8, 64], strides = [1, 1]} : vector<8x256xf32> to vector<8x64xf32>
    %49 = arith.mulf %46, %33 : vector<8x64xf32>
    %50 = arith.mulf %45, %48 : vector<8x64xf32>
    %51 = arith.addf %49, %50 : vector<8x64xf32>
    %52 = math.tanh %51 : vector<8x64xf32>
    %53 = arith.mulf %47, %52 : vector<8x64xf32>
    %c8_23 = arith.constant 8 : index
    %c0_24 = arith.constant 0 : index
    %54 = vector.load %arg1[%c8_23, %c0_24] : memref<64x64xf32, #tpu.memory_space<vmem>>, vector<8x64xf32>
    %cst_25 = arith.constant 5.000000e-01 : f32
    %55 = vector.broadcast %cst_25 : f32 to vector<8x64xf32>
    %56 = arith.cmpf ogt, %54, %55 : vector<8x64xf32>
    %57 = arith.select %56, %53, %32 : vector<8x64xi1>, vector<8x64xf32>
    %58 = arith.select %56, %51, %33 : vector<8x64xi1>, vector<8x64xf32>
    %59 = arith.mulf %54, %53 : vector<8x64xf32>
    %c16 = arith.constant 16 : index
    %c0_26 = arith.constant 0 : index
    %60 = vector.load %arg11[%c16, %c0_26] : memref<64x256xf32, #tpu.memory_space<vmem>>, vector<8x256xf32>
    %61 = arith.truncf %57 : vector<8x64xf32> to vector<8x64xbf16>
    %cst_27 = arith.constant dense<0.000000e+00> : vector<8x256xf32>
    %62 = tpu.matmul %61, %7, %cst_27 {dimension_numbers = #tpu.dot_dimension_numbers<[1], [0], [0], [1], [0, 0, 1, 1], [], []>} : vector<8x64xbf16>, vector<64x256xbf16>, vector<8x256xf32> -> vector<8x256xf32>
    %63 = arith.addf %60, %62 : vector<8x256xf32>
    %64 = math.tanh %63 : vector<8x256xf32>
    %65 = vector.extract_strided_slice %64 {offsets = [0, 0], sizes = [8, 192], strides = [1, 1]} : vector<8x256xf32> to vector<8x192xf32>
    %cst_28 = arith.constant 5.000000e-01 : f32
    %66 = vector.broadcast %cst_28 : f32 to vector<8x192xf32>
    %67 = arith.mulf %66, %65 : vector<8x192xf32>
    %cst_29 = arith.constant 5.000000e-01 : f32
    %68 = vector.broadcast %cst_29 : f32 to vector<8x192xf32>
    %69 = arith.addf %67, %68 : vector<8x192xf32>
    %70 = vector.extract_strided_slice %69 {offsets = [0, 0], sizes = [8, 64], strides = [1, 1]} : vector<8x192xf32> to vector<8x64xf32>
    %71 = vector.extract_strided_slice %69 {offsets = [0, 64], sizes = [8, 64], strides = [1, 1]} : vector<8x192xf32> to vector<8x64xf32>
    %72 = vector.extract_strided_slice %69 {offsets = [0, 128], sizes = [8, 64], strides = [1, 1]} : vector<8x192xf32> to vector<8x64xf32>
    %73 = vector.extract_strided_slice %64 {offsets = [0, 192], sizes = [8, 64], strides = [1, 1]} : vector<8x256xf32> to vector<8x64xf32>
    %74 = arith.mulf %71, %58 : vector<8x64xf32>
    %75 = arith.mulf %70, %73 : vector<8x64xf32>
    %76 = arith.addf %74, %75 : vector<8x64xf32>
    %77 = math.tanh %76 : vector<8x64xf32>
    %78 = arith.mulf %72, %77 : vector<8x64xf32>
    %c16_30 = arith.constant 16 : index
    %c0_31 = arith.constant 0 : index
    %79 = vector.load %arg1[%c16_30, %c0_31] : memref<64x64xf32, #tpu.memory_space<vmem>>, vector<8x64xf32>
    %cst_32 = arith.constant 5.000000e-01 : f32
    %80 = vector.broadcast %cst_32 : f32 to vector<8x64xf32>
    %81 = arith.cmpf ogt, %79, %80 : vector<8x64xf32>
    %82 = arith.select %81, %78, %57 : vector<8x64xi1>, vector<8x64xf32>
    %83 = arith.select %81, %76, %58 : vector<8x64xi1>, vector<8x64xf32>
    %84 = arith.mulf %79, %78 : vector<8x64xf32>
    %c24 = arith.constant 24 : index
    %c0_33 = arith.constant 0 : index
    %85 = vector.load %arg11[%c24, %c0_33] : memref<64x256xf32, #tpu.memory_space<vmem>>, vector<8x256xf32>
    %86 = arith.truncf %82 : vector<8x64xf32> to vector<8x64xbf16>
    %cst_34 = arith.constant dense<0.000000e+00> : vector<8x256xf32>
    %87 = tpu.matmul %86, %7, %cst_34 {dimension_numbers = #tpu.dot_dimension_numbers<[1], [0], [0], [1], [0, 0, 1, 1], [], []>} : vector<8x64xbf16>, vector<64x256xbf16>, vector<8x256xf32> -> vector<8x256xf32>
    %88 = arith.addf %85, %87 : vector<8x256xf32>
    %89 = math.tanh %88 : vector<8x256xf32>
    %90 = vector.extract_strided_slice %89 {offsets = [0, 0], sizes = [8, 192], strides = [1, 1]} : vector<8x256xf32> to vector<8x192xf32>
    %cst_35 = arith.constant 5.000000e-01 : f32
    %91 = vector.broadcast %cst_35 : f32 to vector<8x192xf32>
    %92 = arith.mulf %91, %90 : vector<8x192xf32>
    %cst_36 = arith.constant 5.000000e-01 : f32
    %93 = vector.broadcast %cst_36 : f32 to vector<8x192xf32>
    %94 = arith.addf %92, %93 : vector<8x192xf32>
    %95 = vector.extract_strided_slice %94 {offsets = [0, 0], sizes = [8, 64], strides = [1, 1]} : vector<8x192xf32> to vector<8x64xf32>
    %96 = vector.extract_strided_slice %94 {offsets = [0, 64], sizes = [8, 64], strides = [1, 1]} : vector<8x192xf32> to vector<8x64xf32>
    %97 = vector.extract_strided_slice %94 {offsets = [0, 128], sizes = [8, 64], strides = [1, 1]} : vector<8x192xf32> to vector<8x64xf32>
    %98 = vector.extract_strided_slice %89 {offsets = [0, 192], sizes = [8, 64], strides = [1, 1]} : vector<8x256xf32> to vector<8x64xf32>
    %99 = arith.mulf %96, %83 : vector<8x64xf32>
    %100 = arith.mulf %95, %98 : vector<8x64xf32>
    %101 = arith.addf %99, %100 : vector<8x64xf32>
    %102 = math.tanh %101 : vector<8x64xf32>
    %103 = arith.mulf %97, %102 : vector<8x64xf32>
    %c24_37 = arith.constant 24 : index
    %c0_38 = arith.constant 0 : index
    %104 = vector.load %arg1[%c24_37, %c0_38] : memref<64x64xf32, #tpu.memory_space<vmem>>, vector<8x64xf32>
    %cst_39 = arith.constant 5.000000e-01 : f32
    %105 = vector.broadcast %cst_39 : f32 to vector<8x64xf32>
    %106 = arith.cmpf ogt, %104, %105 : vector<8x64xf32>
    %107 = arith.select %106, %103, %82 : vector<8x64xi1>, vector<8x64xf32>
    %108 = arith.select %106, %101, %83 : vector<8x64xi1>, vector<8x64xf32>
    %109 = arith.mulf %104, %103 : vector<8x64xf32>
    %c32 = arith.constant 32 : index
    %c0_40 = arith.constant 0 : index
    %110 = vector.load %arg11[%c32, %c0_40] : memref<64x256xf32, #tpu.memory_space<vmem>>, vector<8x256xf32>
    %111 = arith.truncf %107 : vector<8x64xf32> to vector<8x64xbf16>
    %cst_41 = arith.constant dense<0.000000e+00> : vector<8x256xf32>
    %112 = tpu.matmul %111, %7, %cst_41 {dimension_numbers = #tpu.dot_dimension_numbers<[1], [0], [0], [1], [0, 0, 1, 1], [], []>} : vector<8x64xbf16>, vector<64x256xbf16>, vector<8x256xf32> -> vector<8x256xf32>
    %113 = arith.addf %110, %112 : vector<8x256xf32>
    %114 = math.tanh %113 : vector<8x256xf32>
    %115 = vector.extract_strided_slice %114 {offsets = [0, 0], sizes = [8, 192], strides = [1, 1]} : vector<8x256xf32> to vector<8x192xf32>
    %cst_42 = arith.constant 5.000000e-01 : f32
    %116 = vector.broadcast %cst_42 : f32 to vector<8x192xf32>
    %117 = arith.mulf %116, %115 : vector<8x192xf32>
    %cst_43 = arith.constant 5.000000e-01 : f32
    %118 = vector.broadcast %cst_43 : f32 to vector<8x192xf32>
    %119 = arith.addf %117, %118 : vector<8x192xf32>
    %120 = vector.extract_strided_slice %119 {offsets = [0, 0], sizes = [8, 64], strides = [1, 1]} : vector<8x192xf32> to vector<8x64xf32>
    %121 = vector.extract_strided_slice %119 {offsets = [0, 64], sizes = [8, 64], strides = [1, 1]} : vector<8x192xf32> to vector<8x64xf32>
    %122 = vector.extract_strided_slice %119 {offsets = [0, 128], sizes = [8, 64], strides = [1, 1]} : vector<8x192xf32> to vector<8x64xf32>
    %123 = vector.extract_strided_slice %114 {offsets = [0, 192], sizes = [8, 64], strides = [1, 1]} : vector<8x256xf32> to vector<8x64xf32>
    %124 = arith.mulf %121, %108 : vector<8x64xf32>
    %125 = arith.mulf %120, %123 : vector<8x64xf32>
    %126 = arith.addf %124, %125 : vector<8x64xf32>
    %127 = math.tanh %126 : vector<8x64xf32>
    %128 = arith.mulf %122, %127 : vector<8x64xf32>
    %c32_44 = arith.constant 32 : index
    %c0_45 = arith.constant 0 : index
    %129 = vector.load %arg1[%c32_44, %c0_45] : memref<64x64xf32, #tpu.memory_space<vmem>>, vector<8x64xf32>
    %cst_46 = arith.constant 5.000000e-01 : f32
    %130 = vector.broadcast %cst_46 : f32 to vector<8x64xf32>
    %131 = arith.cmpf ogt, %129, %130 : vector<8x64xf32>
    %132 = arith.select %131, %128, %107 : vector<8x64xi1>, vector<8x64xf32>
    %133 = arith.select %131, %126, %108 : vector<8x64xi1>, vector<8x64xf32>
    %134 = arith.mulf %129, %128 : vector<8x64xf32>
    %c40 = arith.constant 40 : index
    %c0_47 = arith.constant 0 : index
    %135 = vector.load %arg11[%c40, %c0_47] : memref<64x256xf32, #tpu.memory_space<vmem>>, vector<8x256xf32>
    %136 = arith.truncf %132 : vector<8x64xf32> to vector<8x64xbf16>
    %cst_48 = arith.constant dense<0.000000e+00> : vector<8x256xf32>
    %137 = tpu.matmul %136, %7, %cst_48 {dimension_numbers = #tpu.dot_dimension_numbers<[1], [0], [0], [1], [0, 0, 1, 1], [], []>} : vector<8x64xbf16>, vector<64x256xbf16>, vector<8x256xf32> -> vector<8x256xf32>
    %138 = arith.addf %135, %137 : vector<8x256xf32>
    %139 = math.tanh %138 : vector<8x256xf32>
    %140 = vector.extract_strided_slice %139 {offsets = [0, 0], sizes = [8, 192], strides = [1, 1]} : vector<8x256xf32> to vector<8x192xf32>
    %cst_49 = arith.constant 5.000000e-01 : f32
    %141 = vector.broadcast %cst_49 : f32 to vector<8x192xf32>
    %142 = arith.mulf %141, %140 : vector<8x192xf32>
    %cst_50 = arith.constant 5.000000e-01 : f32
    %143 = vector.broadcast %cst_50 : f32 to vector<8x192xf32>
    %144 = arith.addf %142, %143 : vector<8x192xf32>
    %145 = vector.extract_strided_slice %144 {offsets = [0, 0], sizes = [8, 64], strides = [1, 1]} : vector<8x192xf32> to vector<8x64xf32>
    %146 = vector.extract_strided_slice %144 {offsets = [0, 64], sizes = [8, 64], strides = [1, 1]} : vector<8x192xf32> to vector<8x64xf32>
    %147 = vector.extract_strided_slice %144 {offsets = [0, 128], sizes = [8, 64], strides = [1, 1]} : vector<8x192xf32> to vector<8x64xf32>
    %148 = vector.extract_strided_slice %139 {offsets = [0, 192], sizes = [8, 64], strides = [1, 1]} : vector<8x256xf32> to vector<8x64xf32>
    %149 = arith.mulf %146, %133 : vector<8x64xf32>
    %150 = arith.mulf %145, %148 : vector<8x64xf32>
    %151 = arith.addf %149, %150 : vector<8x64xf32>
    %152 = math.tanh %151 : vector<8x64xf32>
    %153 = arith.mulf %147, %152 : vector<8x64xf32>
    %c40_51 = arith.constant 40 : index
    %c0_52 = arith.constant 0 : index
    %154 = vector.load %arg1[%c40_51, %c0_52] : memref<64x64xf32, #tpu.memory_space<vmem>>, vector<8x64xf32>
    %cst_53 = arith.constant 5.000000e-01 : f32
    %155 = vector.broadcast %cst_53 : f32 to vector<8x64xf32>
    %156 = arith.cmpf ogt, %154, %155 : vector<8x64xf32>
    %157 = arith.select %156, %153, %132 : vector<8x64xi1>, vector<8x64xf32>
    %158 = arith.select %156, %151, %133 : vector<8x64xi1>, vector<8x64xf32>
    %159 = arith.mulf %154, %153 : vector<8x64xf32>
    %c48 = arith.constant 48 : index
    %c0_54 = arith.constant 0 : index
    %160 = vector.load %arg11[%c48, %c0_54] : memref<64x256xf32, #tpu.memory_space<vmem>>, vector<8x256xf32>
    %161 = arith.truncf %157 : vector<8x64xf32> to vector<8x64xbf16>
    %cst_55 = arith.constant dense<0.000000e+00> : vector<8x256xf32>
    %162 = tpu.matmul %161, %7, %cst_55 {dimension_numbers = #tpu.dot_dimension_numbers<[1], [0], [0], [1], [0, 0, 1, 1], [], []>} : vector<8x64xbf16>, vector<64x256xbf16>, vector<8x256xf32> -> vector<8x256xf32>
    %163 = arith.addf %160, %162 : vector<8x256xf32>
    %164 = math.tanh %163 : vector<8x256xf32>
    %165 = vector.extract_strided_slice %164 {offsets = [0, 0], sizes = [8, 192], strides = [1, 1]} : vector<8x256xf32> to vector<8x192xf32>
    %cst_56 = arith.constant 5.000000e-01 : f32
    %166 = vector.broadcast %cst_56 : f32 to vector<8x192xf32>
    %167 = arith.mulf %166, %165 : vector<8x192xf32>
    %cst_57 = arith.constant 5.000000e-01 : f32
    %168 = vector.broadcast %cst_57 : f32 to vector<8x192xf32>
    %169 = arith.addf %167, %168 : vector<8x192xf32>
    %170 = vector.extract_strided_slice %169 {offsets = [0, 0], sizes = [8, 64], strides = [1, 1]} : vector<8x192xf32> to vector<8x64xf32>
    %171 = vector.extract_strided_slice %169 {offsets = [0, 64], sizes = [8, 64], strides = [1, 1]} : vector<8x192xf32> to vector<8x64xf32>
    %172 = vector.extract_strided_slice %169 {offsets = [0, 128], sizes = [8, 64], strides = [1, 1]} : vector<8x192xf32> to vector<8x64xf32>
    %173 = vector.extract_strided_slice %164 {offsets = [0, 192], sizes = [8, 64], strides = [1, 1]} : vector<8x256xf32> to vector<8x64xf32>
    %174 = arith.mulf %171, %158 : vector<8x64xf32>
    %175 = arith.mulf %170, %173 : vector<8x64xf32>
    %176 = arith.addf %174, %175 : vector<8x64xf32>
    %177 = math.tanh %176 : vector<8x64xf32>
    %178 = arith.mulf %172, %177 : vector<8x64xf32>
    %c48_58 = arith.constant 48 : index
    %c0_59 = arith.constant 0 : index
    %179 = vector.load %arg1[%c48_58, %c0_59] : memref<64x64xf32, #tpu.memory_space<vmem>>, vector<8x64xf32>
    %cst_60 = arith.constant 5.000000e-01 : f32
    %180 = vector.broadcast %cst_60 : f32 to vector<8x64xf32>
    %181 = arith.cmpf ogt, %179, %180 : vector<8x64xf32>
    %182 = arith.select %181, %178, %157 : vector<8x64xi1>, vector<8x64xf32>
    %183 = arith.select %181, %176, %158 : vector<8x64xi1>, vector<8x64xf32>
    %184 = arith.mulf %179, %178 : vector<8x64xf32>
    %c56 = arith.constant 56 : index
    %c0_61 = arith.constant 0 : index
    %185 = vector.load %arg11[%c56, %c0_61] : memref<64x256xf32, #tpu.memory_space<vmem>>, vector<8x256xf32>
    %186 = arith.truncf %182 : vector<8x64xf32> to vector<8x64xbf16>
    %cst_62 = arith.constant dense<0.000000e+00> : vector<8x256xf32>
    %187 = tpu.matmul %186, %7, %cst_62 {dimension_numbers = #tpu.dot_dimension_numbers<[1], [0], [0], [1], [0, 0, 1, 1], [], []>} : vector<8x64xbf16>, vector<64x256xbf16>, vector<8x256xf32> -> vector<8x256xf32>
    %188 = arith.addf %185, %187 : vector<8x256xf32>
    %189 = math.tanh %188 : vector<8x256xf32>
    %190 = vector.extract_strided_slice %189 {offsets = [0, 0], sizes = [8, 192], strides = [1, 1]} : vector<8x256xf32> to vector<8x192xf32>
    %cst_63 = arith.constant 5.000000e-01 : f32
    %191 = vector.broadcast %cst_63 : f32 to vector<8x192xf32>
    %192 = arith.mulf %191, %190 : vector<8x192xf32>
    %cst_64 = arith.constant 5.000000e-01 : f32
    %193 = vector.broadcast %cst_64 : f32 to vector<8x192xf32>
    %194 = arith.addf %192, %193 : vector<8x192xf32>
    %195 = vector.extract_strided_slice %194 {offsets = [0, 0], sizes = [8, 64], strides = [1, 1]} : vector<8x192xf32> to vector<8x64xf32>
    %196 = vector.extract_strided_slice %194 {offsets = [0, 64], sizes = [8, 64], strides = [1, 1]} : vector<8x192xf32> to vector<8x64xf32>
    %197 = vector.extract_strided_slice %194 {offsets = [0, 128], sizes = [8, 64], strides = [1, 1]} : vector<8x192xf32> to vector<8x64xf32>
    %198 = vector.extract_strided_slice %189 {offsets = [0, 192], sizes = [8, 64], strides = [1, 1]} : vector<8x256xf32> to vector<8x64xf32>
    %199 = arith.mulf %196, %183 : vector<8x64xf32>
    %200 = arith.mulf %195, %198 : vector<8x64xf32>
    %201 = arith.addf %199, %200 : vector<8x64xf32>
    %202 = math.tanh %201 : vector<8x64xf32>
    %203 = arith.mulf %197, %202 : vector<8x64xf32>
    %c56_65 = arith.constant 56 : index
    %c0_66 = arith.constant 0 : index
    %204 = vector.load %arg1[%c56_65, %c0_66] : memref<64x64xf32, #tpu.memory_space<vmem>>, vector<8x64xf32>
    %205 = arith.mulf %204, %203 : vector<8x64xf32>
    %206 = tpu.concatenate %34, %205 in 1 : vector<8x64xf32>, vector<8x64xf32> -> vector<8x128xf32>
    %207 = tpu.concatenate %59, %184 in 1 : vector<8x64xf32>, vector<8x64xf32> -> vector<8x128xf32>
    %208 = tpu.concatenate %84, %159 in 1 : vector<8x64xf32>, vector<8x64xf32> -> vector<8x128xf32>
    %209 = tpu.concatenate %109, %134 in 1 : vector<8x64xf32>, vector<8x64xf32> -> vector<8x128xf32>
    %210 = tpu.concatenate %134, %109 in 1 : vector<8x64xf32>, vector<8x64xf32> -> vector<8x128xf32>
    %211 = tpu.concatenate %159, %84 in 1 : vector<8x64xf32>, vector<8x64xf32> -> vector<8x128xf32>
    %212 = tpu.concatenate %184, %59 in 1 : vector<8x64xf32>, vector<8x64xf32> -> vector<8x128xf32>
    %213 = tpu.concatenate %205, %34 in 1 : vector<8x64xf32>, vector<8x64xf32> -> vector<8x128xf32>
    %214 = tpu.concatenate %206, %207, %208, %209, %210, %211, %212, %213 in 0 : vector<8x128xf32>, vector<8x128xf32>, vector<8x128xf32>, vector<8x128xf32>, vector<8x128xf32>, vector<8x128xf32>, vector<8x128xf32>, vector<8x128xf32> -> vector<64x128xf32>
    %215 = arith.truncf %214 : vector<64x128xf32> to vector<64x128xbf16>
    %c0_67 = arith.constant 0 : index
    %c0_68 = arith.constant 0 : index
    %216 = vector.load %arg5[%c0_67, %c0_68] : memref<128x256xbf16, #tpu.memory_space<vmem>>, vector<128x256xbf16>
    %cst_69 = arith.constant dense<0.000000e+00> : vector<64x256xf32>
    %217 = tpu.matmul %215, %216, %cst_69 {dimension_numbers = #tpu.dot_dimension_numbers<[1], [0], [0], [1], [0, 0, 1, 1], [], []>} : vector<64x128xbf16>, vector<128x256xbf16>, vector<64x256xf32> -> vector<64x256xf32>
    %c0_70 = arith.constant 0 : index
    %c0_71 = arith.constant 0 : index
    %218 = vector.load %arg7[%c0_70, %c0_71] : memref<1x256xf32, #tpu.memory_space<vmem>>, vector<1x256xf32>
    %219 = vector.broadcast %218 : vector<1x256xf32> to vector<64x256xf32>
    %220 = arith.addf %217, %219 : vector<64x256xf32>
    %c0_72 = arith.constant 0 : index
    %c0_73 = arith.constant 0 : index
    %221 = vector.load %arg11[%c0_72, %c0_73] : memref<64x256xf32, #tpu.memory_space<vmem>>, vector<64x256xf32>
    tpu.vector_store %arg11[%c0_72, %c0_73], %220 {strides = array<i32>} : memref<64x256xf32, #tpu.memory_space<vmem>>, vector<64x256xf32>,
    %c0_74 = arith.constant 0 : index
    %c0_75 = arith.constant 0 : index
    %222 = vector.load %arg6[%c0_74, %c0_75] : memref<64x256xbf16, #tpu.memory_space<vmem>>, vector<64x256xbf16>
    %cst_76 = arith.constant 0.000000e+00 : f32
    %223 = vector.broadcast %cst_76 : f32 to vector<8x64xf32>
    %cst_77 = arith.constant 0.000000e+00 : f32
    %224 = vector.broadcast %cst_77 : f32 to vector<8x64xf32>
    %c0_78 = arith.constant 0 : index
    %c0_79 = arith.constant 0 : index
    %225 = vector.load %arg11[%c0_78, %c0_79] : memref<64x256xf32, #tpu.memory_space<vmem>>, vector<8x256xf32>
    %226 = arith.truncf %223 : vector<8x64xf32> to vector<8x64xbf16>
    %cst_80 = arith.constant dense<0.000000e+00> : vector<8x256xf32>
    %227 = tpu.matmul %226, %222, %cst_80 {dimension_numbers = #tpu.dot_dimension_numbers<[1], [0], [0], [1], [0, 0, 1, 1], [], []>} : vector<8x64xbf16>, vector<64x256xbf16>, vector<8x256xf32> -> vector<8x256xf32>
    %228 = arith.addf %225, %227 : vector<8x256xf32>
    %229 = math.tanh %228 : vector<8x256xf32>
    %230 = vector.extract_strided_slice %229 {offsets = [0, 0], sizes = [8, 192], strides = [1, 1]} : vector<8x256xf32> to vector<8x192xf32>
    %cst_81 = arith.constant 5.000000e-01 : f32
    %231 = vector.broadcast %cst_81 : f32 to vector<8x192xf32>
    %232 = arith.mulf %231, %230 : vector<8x192xf32>
    %cst_82 = arith.constant 5.000000e-01 : f32
    %233 = vector.broadcast %cst_82 : f32 to vector<8x192xf32>
    %234 = arith.addf %232, %233 : vector<8x192xf32>
    %235 = vector.extract_strided_slice %234 {offsets = [0, 0], sizes = [8, 64], strides = [1, 1]} : vector<8x192xf32> to vector<8x64xf32>
    %236 = vector.extract_strided_slice %234 {offsets = [0, 64], sizes = [8, 64], strides = [1, 1]} : vector<8x192xf32> to vector<8x64xf32>
    %237 = vector.extract_strided_slice %234 {offsets = [0, 128], sizes = [8, 64], strides = [1, 1]} : vector<8x192xf32> to vector<8x64xf32>
    %238 = vector.extract_strided_slice %229 {offsets = [0, 192], sizes = [8, 64], strides = [1, 1]} : vector<8x256xf32> to vector<8x64xf32>
    %239 = arith.mulf %236, %224 : vector<8x64xf32>
    %240 = arith.mulf %235, %238 : vector<8x64xf32>
    %241 = arith.addf %239, %240 : vector<8x64xf32>
    %242 = math.tanh %241 : vector<8x64xf32>
    %243 = arith.mulf %237, %242 : vector<8x64xf32>
    %c0_83 = arith.constant 0 : index
    %c0_84 = arith.constant 0 : index
    %244 = vector.load %arg1[%c0_83, %c0_84] : memref<64x64xf32, #tpu.memory_space<vmem>>, vector<8x64xf32>
    %cst_85 = arith.constant 5.000000e-01 : f32
    %245 = vector.broadcast %cst_85 : f32 to vector<8x64xf32>
    %246 = arith.cmpf ogt, %244, %245 : vector<8x64xf32>
    %247 = arith.select %246, %243, %223 : vector<8x64xi1>, vector<8x64xf32>
    %248 = arith.select %246, %241, %224 : vector<8x64xi1>, vector<8x64xf32>
    %c8_86 = arith.constant 8 : index
    %c0_87 = arith.constant 0 : index
    %249 = vector.load %arg11[%c8_86, %c0_87] : memref<64x256xf32, #tpu.memory_space<vmem>>, vector<8x256xf32>
    %250 = arith.truncf %247 : vector<8x64xf32> to vector<8x64xbf16>
    %cst_88 = arith.constant dense<0.000000e+00> : vector<8x256xf32>
    %251 = tpu.matmul %250, %222, %cst_88 {dimension_numbers = #tpu.dot_dimension_numbers<[1], [0], [0], [1], [0, 0, 1, 1], [], []>} : vector<8x64xbf16>, vector<64x256xbf16>, vector<8x256xf32> -> vector<8x256xf32>
    %252 = arith.addf %249, %251 : vector<8x256xf32>
    %253 = math.tanh %252 : vector<8x256xf32>
    %254 = vector.extract_strided_slice %253 {offsets = [0, 0], sizes = [8, 192], strides = [1, 1]} : vector<8x256xf32> to vector<8x192xf32>
    %cst_89 = arith.constant 5.000000e-01 : f32
    %255 = vector.broadcast %cst_89 : f32 to vector<8x192xf32>
    %256 = arith.mulf %255, %254 : vector<8x192xf32>
    %cst_90 = arith.constant 5.000000e-01 : f32
    %257 = vector.broadcast %cst_90 : f32 to vector<8x192xf32>
    %258 = arith.addf %256, %257 : vector<8x192xf32>
    %259 = vector.extract_strided_slice %258 {offsets = [0, 0], sizes = [8, 64], strides = [1, 1]} : vector<8x192xf32> to vector<8x64xf32>
    %260 = vector.extract_strided_slice %258 {offsets = [0, 64], sizes = [8, 64], strides = [1, 1]} : vector<8x192xf32> to vector<8x64xf32>
    %261 = vector.extract_strided_slice %258 {offsets = [0, 128], sizes = [8, 64], strides = [1, 1]} : vector<8x192xf32> to vector<8x64xf32>
    %262 = vector.extract_strided_slice %253 {offsets = [0, 192], sizes = [8, 64], strides = [1, 1]} : vector<8x256xf32> to vector<8x64xf32>
    %263 = arith.mulf %260, %248 : vector<8x64xf32>
    %264 = arith.mulf %259, %262 : vector<8x64xf32>
    %265 = arith.addf %263, %264 : vector<8x64xf32>
    %266 = math.tanh %265 : vector<8x64xf32>
    %267 = arith.mulf %261, %266 : vector<8x64xf32>
    %c8_91 = arith.constant 8 : index
    %c0_92 = arith.constant 0 : index
    %268 = vector.load %arg1[%c8_91, %c0_92] : memref<64x64xf32, #tpu.memory_space<vmem>>, vector<8x64xf32>
    %cst_93 = arith.constant 5.000000e-01 : f32
    %269 = vector.broadcast %cst_93 : f32 to vector<8x64xf32>
    %270 = arith.cmpf ogt, %268, %269 : vector<8x64xf32>
    %271 = arith.select %270, %267, %247 : vector<8x64xi1>, vector<8x64xf32>
    %272 = arith.select %270, %265, %248 : vector<8x64xi1>, vector<8x64xf32>
    %c16_94 = arith.constant 16 : index
    %c0_95 = arith.constant 0 : index
    %273 = vector.load %arg11[%c16_94, %c0_95] : memref<64x256xf32, #tpu.memory_space<vmem>>, vector<8x256xf32>
    %274 = arith.truncf %271 : vector<8x64xf32> to vector<8x64xbf16>
    %cst_96 = arith.constant dense<0.000000e+00> : vector<8x256xf32>
    %275 = tpu.matmul %274, %222, %cst_96 {dimension_numbers = #tpu.dot_dimension_numbers<[1], [0], [0], [1], [0, 0, 1, 1], [], []>} : vector<8x64xbf16>, vector<64x256xbf16>, vector<8x256xf32> -> vector<8x256xf32>
    %276 = arith.addf %273, %275 : vector<8x256xf32>
    %277 = math.tanh %276 : vector<8x256xf32>
    %278 = vector.extract_strided_slice %277 {offsets = [0, 0], sizes = [8, 192], strides = [1, 1]} : vector<8x256xf32> to vector<8x192xf32>
    %cst_97 = arith.constant 5.000000e-01 : f32
    %279 = vector.broadcast %cst_97 : f32 to vector<8x192xf32>
    %280 = arith.mulf %279, %278 : vector<8x192xf32>
    %cst_98 = arith.constant 5.000000e-01 : f32
    %281 = vector.broadcast %cst_98 : f32 to vector<8x192xf32>
    %282 = arith.addf %280, %281 : vector<8x192xf32>
    %283 = vector.extract_strided_slice %282 {offsets = [0, 0], sizes = [8, 64], strides = [1, 1]} : vector<8x192xf32> to vector<8x64xf32>
    %284 = vector.extract_strided_slice %282 {offsets = [0, 64], sizes = [8, 64], strides = [1, 1]} : vector<8x192xf32> to vector<8x64xf32>
    %285 = vector.extract_strided_slice %282 {offsets = [0, 128], sizes = [8, 64], strides = [1, 1]} : vector<8x192xf32> to vector<8x64xf32>
    %286 = vector.extract_strided_slice %277 {offsets = [0, 192], sizes = [8, 64], strides = [1, 1]} : vector<8x256xf32> to vector<8x64xf32>
    %287 = arith.mulf %284, %272 : vector<8x64xf32>
    %288 = arith.mulf %283, %286 : vector<8x64xf32>
    %289 = arith.addf %287, %288 : vector<8x64xf32>
    %290 = math.tanh %289 : vector<8x64xf32>
    %291 = arith.mulf %285, %290 : vector<8x64xf32>
    %c16_99 = arith.constant 16 : index
    %c0_100 = arith.constant 0 : index
    %292 = vector.load %arg1[%c16_99, %c0_100] : memref<64x64xf32, #tpu.memory_space<vmem>>, vector<8x64xf32>
    %cst_101 = arith.constant 5.000000e-01 : f32
    %293 = vector.broadcast %cst_101 : f32 to vector<8x64xf32>
    %294 = arith.cmpf ogt, %292, %293 : vector<8x64xf32>
    %295 = arith.select %294, %291, %271 : vector<8x64xi1>, vector<8x64xf32>
    %296 = arith.select %294, %289, %272 : vector<8x64xi1>, vector<8x64xf32>
    %c24_102 = arith.constant 24 : index
    %c0_103 = arith.constant 0 : index
    %297 = vector.load %arg11[%c24_102, %c0_103] : memref<64x256xf32, #tpu.memory_space<vmem>>, vector<8x256xf32>
    %298 = arith.truncf %295 : vector<8x64xf32> to vector<8x64xbf16>
    %cst_104 = arith.constant dense<0.000000e+00> : vector<8x256xf32>
    %299 = tpu.matmul %298, %222, %cst_104 {dimension_numbers = #tpu.dot_dimension_numbers<[1], [0], [0], [1], [0, 0, 1, 1], [], []>} : vector<8x64xbf16>, vector<64x256xbf16>, vector<8x256xf32> -> vector<8x256xf32>
    %300 = arith.addf %297, %299 : vector<8x256xf32>
    %301 = math.tanh %300 : vector<8x256xf32>
    %302 = vector.extract_strided_slice %301 {offsets = [0, 0], sizes = [8, 192], strides = [1, 1]} : vector<8x256xf32> to vector<8x192xf32>
    %cst_105 = arith.constant 5.000000e-01 : f32
    %303 = vector.broadcast %cst_105 : f32 to vector<8x192xf32>
    %304 = arith.mulf %303, %302 : vector<8x192xf32>
    %cst_106 = arith.constant 5.000000e-01 : f32
    %305 = vector.broadcast %cst_106 : f32 to vector<8x192xf32>
    %306 = arith.addf %304, %305 : vector<8x192xf32>
    %307 = vector.extract_strided_slice %306 {offsets = [0, 0], sizes = [8, 64], strides = [1, 1]} : vector<8x192xf32> to vector<8x64xf32>
    %308 = vector.extract_strided_slice %306 {offsets = [0, 64], sizes = [8, 64], strides = [1, 1]} : vector<8x192xf32> to vector<8x64xf32>
    %309 = vector.extract_strided_slice %306 {offsets = [0, 128], sizes = [8, 64], strides = [1, 1]} : vector<8x192xf32> to vector<8x64xf32>
    %310 = vector.extract_strided_slice %301 {offsets = [0, 192], sizes = [8, 64], strides = [1, 1]} : vector<8x256xf32> to vector<8x64xf32>
    %311 = arith.mulf %308, %296 : vector<8x64xf32>
    %312 = arith.mulf %307, %310 : vector<8x64xf32>
    %313 = arith.addf %311, %312 : vector<8x64xf32>
    %314 = math.tanh %313 : vector<8x64xf32>
    %315 = arith.mulf %309, %314 : vector<8x64xf32>
    %c24_107 = arith.constant 24 : index
    %c0_108 = arith.constant 0 : index
    %316 = vector.load %arg1[%c24_107, %c0_108] : memref<64x64xf32, #tpu.memory_space<vmem>>, vector<8x64xf32>
    %cst_109 = arith.constant 5.000000e-01 : f32
    %317 = vector.broadcast %cst_109 : f32 to vector<8x64xf32>
    %318 = arith.cmpf ogt, %316, %317 : vector<8x64xf32>
    %319 = arith.select %318, %315, %295 : vector<8x64xi1>, vector<8x64xf32>
    %320 = arith.select %318, %313, %296 : vector<8x64xi1>, vector<8x64xf32>
    %c32_110 = arith.constant 32 : index
    %c0_111 = arith.constant 0 : index
    %321 = vector.load %arg11[%c32_110, %c0_111] : memref<64x256xf32, #tpu.memory_space<vmem>>, vector<8x256xf32>
    %322 = arith.truncf %319 : vector<8x64xf32> to vector<8x64xbf16>
    %cst_112 = arith.constant dense<0.000000e+00> : vector<8x256xf32>
    %323 = tpu.matmul %322, %222, %cst_112 {dimension_numbers = #tpu.dot_dimension_numbers<[1], [0], [0], [1], [0, 0, 1, 1], [], []>} : vector<8x64xbf16>, vector<64x256xbf16>, vector<8x256xf32> -> vector<8x256xf32>
    %324 = arith.addf %321, %323 : vector<8x256xf32>
    %325 = math.tanh %324 : vector<8x256xf32>
    %326 = vector.extract_strided_slice %325 {offsets = [0, 0], sizes = [8, 192], strides = [1, 1]} : vector<8x256xf32> to vector<8x192xf32>
    %cst_113 = arith.constant 5.000000e-01 : f32
    %327 = vector.broadcast %cst_113 : f32 to vector<8x192xf32>
    %328 = arith.mulf %327, %326 : vector<8x192xf32>
    %cst_114 = arith.constant 5.000000e-01 : f32
    %329 = vector.broadcast %cst_114 : f32 to vector<8x192xf32>
    %330 = arith.addf %328, %329 : vector<8x192xf32>
    %331 = vector.extract_strided_slice %330 {offsets = [0, 0], sizes = [8, 64], strides = [1, 1]} : vector<8x192xf32> to vector<8x64xf32>
    %332 = vector.extract_strided_slice %330 {offsets = [0, 64], sizes = [8, 64], strides = [1, 1]} : vector<8x192xf32> to vector<8x64xf32>
    %333 = vector.extract_strided_slice %330 {offsets = [0, 128], sizes = [8, 64], strides = [1, 1]} : vector<8x192xf32> to vector<8x64xf32>
    %334 = vector.extract_strided_slice %325 {offsets = [0, 192], sizes = [8, 64], strides = [1, 1]} : vector<8x256xf32> to vector<8x64xf32>
    %335 = arith.mulf %332, %320 : vector<8x64xf32>
    %336 = arith.mulf %331, %334 : vector<8x64xf32>
    %337 = arith.addf %335, %336 : vector<8x64xf32>
    %338 = math.tanh %337 : vector<8x64xf32>
    %339 = arith.mulf %333, %338 : vector<8x64xf32>
    %c32_115 = arith.constant 32 : index
    %c0_116 = arith.constant 0 : index
    %340 = vector.load %arg1[%c32_115, %c0_116] : memref<64x64xf32, #tpu.memory_space<vmem>>, vector<8x64xf32>
    %cst_117 = arith.constant 5.000000e-01 : f32
    %341 = vector.broadcast %cst_117 : f32 to vector<8x64xf32>
    %342 = arith.cmpf ogt, %340, %341 : vector<8x64xf32>
    %343 = arith.select %342, %339, %319 : vector<8x64xi1>, vector<8x64xf32>
    %344 = arith.select %342, %337, %320 : vector<8x64xi1>, vector<8x64xf32>
    %c40_118 = arith.constant 40 : index
    %c0_119 = arith.constant 0 : index
    %345 = vector.load %arg11[%c40_118, %c0_119] : memref<64x256xf32, #tpu.memory_space<vmem>>, vector<8x256xf32>
    %346 = arith.truncf %343 : vector<8x64xf32> to vector<8x64xbf16>
    %cst_120 = arith.constant dense<0.000000e+00> : vector<8x256xf32>
    %347 = tpu.matmul %346, %222, %cst_120 {dimension_numbers = #tpu.dot_dimension_numbers<[1], [0], [0], [1], [0, 0, 1, 1], [], []>} : vector<8x64xbf16>, vector<64x256xbf16>, vector<8x256xf32> -> vector<8x256xf32>
    %348 = arith.addf %345, %347 : vector<8x256xf32>
    %349 = math.tanh %348 : vector<8x256xf32>
    %350 = vector.extract_strided_slice %349 {offsets = [0, 0], sizes = [8, 192], strides = [1, 1]} : vector<8x256xf32> to vector<8x192xf32>
    %cst_121 = arith.constant 5.000000e-01 : f32
    %351 = vector.broadcast %cst_121 : f32 to vector<8x192xf32>
    %352 = arith.mulf %351, %350 : vector<8x192xf32>
    %cst_122 = arith.constant 5.000000e-01 : f32
    %353 = vector.broadcast %cst_122 : f32 to vector<8x192xf32>
    %354 = arith.addf %352, %353 : vector<8x192xf32>
    %355 = vector.extract_strided_slice %354 {offsets = [0, 0], sizes = [8, 64], strides = [1, 1]} : vector<8x192xf32> to vector<8x64xf32>
    %356 = vector.extract_strided_slice %354 {offsets = [0, 64], sizes = [8, 64], strides = [1, 1]} : vector<8x192xf32> to vector<8x64xf32>
    %357 = vector.extract_strided_slice %354 {offsets = [0, 128], sizes = [8, 64], strides = [1, 1]} : vector<8x192xf32> to vector<8x64xf32>
    %358 = vector.extract_strided_slice %349 {offsets = [0, 192], sizes = [8, 64], strides = [1, 1]} : vector<8x256xf32> to vector<8x64xf32>
    %359 = arith.mulf %356, %344 : vector<8x64xf32>
    %360 = arith.mulf %355, %358 : vector<8x64xf32>
    %361 = arith.addf %359, %360 : vector<8x64xf32>
    %362 = math.tanh %361 : vector<8x64xf32>
    %363 = arith.mulf %357, %362 : vector<8x64xf32>
    %c40_123 = arith.constant 40 : index
    %c0_124 = arith.constant 0 : index
    %364 = vector.load %arg1[%c40_123, %c0_124] : memref<64x64xf32, #tpu.memory_space<vmem>>, vector<8x64xf32>
    %cst_125 = arith.constant 5.000000e-01 : f32
    %365 = vector.broadcast %cst_125 : f32 to vector<8x64xf32>
    %366 = arith.cmpf ogt, %364, %365 : vector<8x64xf32>
    %367 = arith.select %366, %363, %343 : vector<8x64xi1>, vector<8x64xf32>
    %368 = arith.select %366, %361, %344 : vector<8x64xi1>, vector<8x64xf32>
    %c48_126 = arith.constant 48 : index
    %c0_127 = arith.constant 0 : index
    %369 = vector.load %arg11[%c48_126, %c0_127] : memref<64x256xf32, #tpu.memory_space<vmem>>, vector<8x256xf32>
    %370 = arith.truncf %367 : vector<8x64xf32> to vector<8x64xbf16>
    %cst_128 = arith.constant dense<0.000000e+00> : vector<8x256xf32>
    %371 = tpu.matmul %370, %222, %cst_128 {dimension_numbers = #tpu.dot_dimension_numbers<[1], [0], [0], [1], [0, 0, 1, 1], [], []>} : vector<8x64xbf16>, vector<64x256xbf16>, vector<8x256xf32> -> vector<8x256xf32>
    %372 = arith.addf %369, %371 : vector<8x256xf32>
    %373 = math.tanh %372 : vector<8x256xf32>
    %374 = vector.extract_strided_slice %373 {offsets = [0, 0], sizes = [8, 192], strides = [1, 1]} : vector<8x256xf32> to vector<8x192xf32>
    %cst_129 = arith.constant 5.000000e-01 : f32
    %375 = vector.broadcast %cst_129 : f32 to vector<8x192xf32>
    %376 = arith.mulf %375, %374 : vector<8x192xf32>
    %cst_130 = arith.constant 5.000000e-01 : f32
    %377 = vector.broadcast %cst_130 : f32 to vector<8x192xf32>
    %378 = arith.addf %376, %377 : vector<8x192xf32>
    %379 = vector.extract_strided_slice %378 {offsets = [0, 0], sizes = [8, 64], strides = [1, 1]} : vector<8x192xf32> to vector<8x64xf32>
    %380 = vector.extract_strided_slice %378 {offsets = [0, 64], sizes = [8, 64], strides = [1, 1]} : vector<8x192xf32> to vector<8x64xf32>
    %381 = vector.extract_strided_slice %378 {offsets = [0, 128], sizes = [8, 64], strides = [1, 1]} : vector<8x192xf32> to vector<8x64xf32>
    %382 = vector.extract_strided_slice %373 {offsets = [0, 192], sizes = [8, 64], strides = [1, 1]} : vector<8x256xf32> to vector<8x64xf32>
    %383 = arith.mulf %380, %368 : vector<8x64xf32>
    %384 = arith.mulf %379, %382 : vector<8x64xf32>
    %385 = arith.addf %383, %384 : vector<8x64xf32>
    %386 = math.tanh %385 : vector<8x64xf32>
    %387 = arith.mulf %381, %386 : vector<8x64xf32>
    %c48_131 = arith.constant 48 : index
    %c0_132 = arith.constant 0 : index
    %388 = vector.load %arg1[%c48_131, %c0_132] : memref<64x64xf32, #tpu.memory_space<vmem>>, vector<8x64xf32>
    %cst_133 = arith.constant 5.000000e-01 : f32
    %389 = vector.broadcast %cst_133 : f32 to vector<8x64xf32>
    %390 = arith.cmpf ogt, %388, %389 : vector<8x64xf32>
    %391 = arith.select %390, %387, %367 : vector<8x64xi1>, vector<8x64xf32>
    %392 = arith.select %390, %385, %368 : vector<8x64xi1>, vector<8x64xf32>
    %c56_134 = arith.constant 56 : index
    %c0_135 = arith.constant 0 : index
    %393 = vector.load %arg11[%c56_134, %c0_135] : memref<64x256xf32, #tpu.memory_space<vmem>>, vector<8x256xf32>
    %394 = arith.truncf %391 : vector<8x64xf32> to vector<8x64xbf16>
    %cst_136 = arith.constant dense<0.000000e+00> : vector<8x256xf32>
    %395 = tpu.matmul %394, %222, %cst_136 {dimension_numbers = #tpu.dot_dimension_numbers<[1], [0], [0], [1], [0, 0, 1, 1], [], []>} : vector<8x64xbf16>, vector<64x256xbf16>, vector<8x256xf32> -> vector<8x256xf32>
    %396 = arith.addf %393, %395 : vector<8x256xf32>
    %397 = math.tanh %396 : vector<8x256xf32>
    %398 = vector.extract_strided_slice %397 {offsets = [0, 0], sizes = [8, 192], strides = [1, 1]} : vector<8x256xf32> to vector<8x192xf32>
    %cst_137 = arith.constant 5.000000e-01 : f32
    %399 = vector.broadcast %cst_137 : f32 to vector<8x192xf32>
    %400 = arith.mulf %399, %398 : vector<8x192xf32>
    %cst_138 = arith.constant 5.000000e-01 : f32
    %401 = vector.broadcast %cst_138 : f32 to vector<8x192xf32>
    %402 = arith.addf %400, %401 : vector<8x192xf32>
    %403 = vector.extract_strided_slice %402 {offsets = [0, 0], sizes = [8, 64], strides = [1, 1]} : vector<8x192xf32> to vector<8x64xf32>
    %404 = vector.extract_strided_slice %402 {offsets = [0, 64], sizes = [8, 64], strides = [1, 1]} : vector<8x192xf32> to vector<8x64xf32>
    %405 = vector.extract_strided_slice %402 {offsets = [0, 128], sizes = [8, 64], strides = [1, 1]} : vector<8x192xf32> to vector<8x64xf32>
    %406 = vector.extract_strided_slice %397 {offsets = [0, 192], sizes = [8, 64], strides = [1, 1]} : vector<8x256xf32> to vector<8x64xf32>
    %407 = arith.mulf %404, %392 : vector<8x64xf32>
    %408 = arith.mulf %403, %406 : vector<8x64xf32>
    %409 = arith.addf %407, %408 : vector<8x64xf32>
    %410 = math.tanh %409 : vector<8x64xf32>
    %411 = arith.mulf %405, %410 : vector<8x64xf32>
    %c56_139 = arith.constant 56 : index
    %c0_140 = arith.constant 0 : index
    %412 = vector.load %arg1[%c56_139, %c0_140] : memref<64x64xf32, #tpu.memory_space<vmem>>, vector<8x64xf32>
    %cst_141 = arith.constant 5.000000e-01 : f32
    %413 = vector.broadcast %cst_141 : f32 to vector<8x64xf32>
    %414 = arith.cmpf ogt, %412, %413 : vector<8x64xf32>
    %415 = arith.select %414, %411, %391 : vector<8x64xi1>, vector<8x64xf32>
    %416 = arith.truncf %415 : vector<8x64xf32> to vector<8x64xbf16>
    %c0_142 = arith.constant 0 : index
    %c0_143 = arith.constant 0 : index
    %417 = vector.load %arg8[%c0_142, %c0_143] : memref<64x128xbf16, #tpu.memory_space<vmem>>, vector<64x128xbf16>
    %cst_144 = arith.constant dense<0.000000e+00> : vector<8x128xf32>
    %418 = tpu.matmul %416, %417, %cst_144 {dimension_numbers = #tpu.dot_dimension_numbers<[1], [0], [0], [1], [0, 0, 1, 1], [], []>} : vector<8x64xbf16>, vector<64x128xbf16>, vector<8x128xf32> -> vector<8x128xf32>
    %c0_145 = arith.constant 0 : index
    %c0_146 = arith.constant 0 : index
    %419 = vector.load %arg9[%c0_145, %c0_146] : memref<1x128xf32, #tpu.memory_space<vmem>>, vector<1x128xf32>
    %420 = vector.broadcast %419 : vector<1x128xf32> to vector<8x128xf32>
    %421 = arith.addf %418, %420 : vector<8x128xf32>
    %c0_147 = arith.constant 0 : index
    %c0_148 = arith.constant 0 : index
    %422 = vector.load %arg10[%c0_147, %c0_148] : memref<8x128xf32, #tpu.memory_space<vmem>>, vector<8x128xf32>
    tpu.vector_store %arg10[%c0_147, %c0_148], %421 {strides = array<i32>} : memref<8x128xf32, #tpu.memory_space<vmem>>, vector<8x128xf32>,
    return
  }
}

</mosaic_0001>

<bundles_post_ra>
// kernel: lstm_forward.1
= control target key start
LH: loop header
LB: loop body
LE: loop exit
PB: predicated region body
PF: predicated region fallthrough
CT: control target
= control target key end

     0   :  { %v2218_v1 = vmov 0   ;;  %vm100_vm0 = vcmask 261120   ;;  %v50_v14 = vlaneseq  ;;  %vm252_vm2 = vcmask 523264   ;;  %s3008_s3 = inlined_call_operand.vmem [shape: bf16[64,256], index: 3, kind: input, shape index: {}]   ;;  %s3009_s2 = inlined_call_operand.vmem [shape: bf16[32,256], index: 2, kind: input, shape index: {}]   ;;  %s3010_s0 = inlined_call_operand.vmem [shape: bf16[64,32], index: 0, kind: input, shape index: {}]   ;;  %s3011_s4 = inlined_call_operand.vmem [shape: f32[1,256], index: 4, kind: input, shape index: {}]   ;;  %s3012_s1 = inlined_call_operand.vmem [shape: f32[64,64], index: 1, kind: input, shape index: {}]   ;;  %s3013_s5 = inlined_call_operand.vmem [shape: bf16[128,256], index: 5, kind: input, shape index: {}]   ;;  %s3014_s6 = inlined_call_operand.vmem [shape: bf16[64,256], index: 6, kind: input, shape index: {}]   ;;  %s3015_s7 = inlined_call_operand.vmem [shape: f32[1,256], index: 7, kind: input, shape index: {}]   ;;  %s3016_s8 = inlined_call_operand.vmem [shape: bf16[64,128], index: 8, kind: input, shape index: {}]   ;;  %s3017_s9 = inlined_call_operand.vmem [shape: f32[1,128], index: 9, kind: input, shape index: {}]   ;;  %s3018_s10 = inlined_call_operand.vmem [shape: f32[8,128], index: 10, kind: output, shape index: {}]  }
   0x1   :  { %v2280_v0 = vld [vmem:[%s3008_s3 + $0x4] ss:$8 sps:$4 sm:$0xff]   ;;  %145 = vmatprep.mubr.bf16.mxu0 %v2218_v1  ;;  %288 = vmatprep.mubr.bf16.mxu1 %v2218_v1  ;;  %v2287_v2 = vld [vmem:[%s3008_s3] ss:$8 sps:$4 sm:$0xff]   ;;  %v2300_v5 = vld [vmem:[%s3008_s3 + $0x14] ss:$8 sps:$4 sm:$0xff]  }
   0x2   :  { %256 = vmatprep.subr.bf16.mxu1 %v2280_v0  ;;  %v2063_v3 = vld [vmem:[%s3009_s2 + $0x4] ss:$8 sps:$4 sm:$0xff]   ;;  %v2065_v4 = vld [vmem:[%s3009_s2] ss:$8 sps:$4 sm:$0xff]   ;;  %v2305_v6 = vld [vmem:[%s3008_s3 + $0x10] ss:$8 sps:$4 sm:$0xff]  }
   0x3   :  { %257 = vmatpush1.bf16.msra.mxu1 %v2287_v2  ;;  %113 = vmatprep.subr.bf16.mxu0 %v2063_v3  ;;  %v2069_v7 = vld [vmem:[%s3009_s2 + $0x14] ss:$8 sps:$4 sm:$0xff]   ;;  %v2071_v8 = vld [vmem:[%s3009_s2 + $0x10] ss:$8 sps:$4 sm:$0xff]   ;;  %v2317_v9 = vld [vmem:[%s3008_s3 + $0x24] ss:$8 sps:$4 sm:$0xff]  }
   0x4   :  { %114 = vmatpush1.bf16.msra.mxu0 %v2065_v4  ;;  %258 = vmatprep.subr.bf16.mxu1 %v2300_v5  ;;  %v2323_v10 = vld [vmem:[%s3008_s3 + $0x20] ss:$8 sps:$4 sm:$0xff]   ;;  %v2332_v12 = vld [vmem:[%s3008_s3 + $0x34] ss:$8 sps:$4 sm:$0xff]   ;;  %v2339_v13 = vld [vmem:[%s3008_s3 + $0x30] ss:$8 sps:$4 sm:$0xff]  }
   0x5   :  { %115 = vmatprep.subr.bf16.mxu0 %v2069_v7  ;;  %v2075_v11 = vld [vmem:[%s3010_s0] sm:$0xff]   ;;  %v2364_v15 = vshrl.u32 %v50_v14, 7  ;;  %v2079_v7 = vld [vmem:[%s3010_s0 + $0x8] sm:$0xff]   ;;  %vm2221_vm9 = vmmov 0  }
   0x6   :  { %v48_v17 = vld [vmem:[%s3011_s4] sm:$0x3]  ;;  %s2219_s4 = smov 64  }
   0x7   :  { %259 = vmatpush1.bf16.msra.mxu1 %v2305_v6  ;;  %v52_v16 = vsub.s32 0, %v2364_v15  ;;  %v56_v18 = vsub.s32 1, %v2364_v15  ;;  %v2388_v44 = vld [vmem:[%s3012_s1] sm:$0xff] }
   0x8   :  { %260 = vmatprep.subr.bf16.mxu1 %v2317_v9  ;;  %116 = vmatpush1.bf16.msra.mxu0 %v2071_v8  ;;  %vm323_vm1 = vcmp.gt.f32.partialorder %v2388_v44, 0.5  ;;  %v2080_v8 = vld [vmem:[%s3010_s0 + $0x10] sm:$0xff]  }
   0x9   :  { %422 = vmatprep.subr.bf16.mxu0 %v2280_v0  ;;  %v2373_v19 = vrot.slane %v48_v17, %v52_v16  ;;  %v2377_v21 = vrot.slane %v48_v17, %v56_v18 }
   0xb   :  { %261 = vmatpush1.bf16.msra.mxu1 %v2323_v10  ;;  %1963 = vmatmul.mubr.msk.bf16.vlgmr.msra.gmra.mrb[0].mxu0 %vm100_vm0, %v2075_v11  ;;  %v2081_v11 = vld [vmem:[%s3010_s0 + $0x18] sm:$0xff]  }
   0xc   :  { %262 = vmatprep.subr.bf16.mxu1 %v2332_v12  ;;  %423 = vmatpush1.bf16.msra.mxu0 %v2287_v2 }
   0xd   :  { %155 = vmatprep.mubr.bf16.mxu0 %v2218_v1  ;;  %424 = vmatprep.subr.bf16.mxu0 %v2300_v5 }
   0xf   :  { %263 = vmatpush1.bf16.msra.mxu1 %v2339_v13 }
  0x10   :  { %337 = vmatprep.subr.bf16.mxu1 %v2280_v0  ;;  %425 = vmatpush1.bf16.msra.mxu0 %v2305_v6 }
  0x11   :  { %426 = vmatprep.subr.bf16.mxu0 %v2317_v9 }
  0x12   :  { %289 = vmatmul.mubr.bf16.vlgmr.msra.gmra.mrb[0].mxu1 %v2218_v1 }
  0x13   :  { %338 = vmatpush1.bf16.msra.mxu1 %v2287_v2  ;;  %369 = vmatprep.mubr.bf16.mxu1 %v2218_v1 }
  0x14   :  { %339 = vmatprep.subr.bf16.mxu1 %v2300_v5  ;;  %427 = vmatpush1.bf16.msra.mxu0 %v2323_v10 }
  0x15   :  { %428 = vmatprep.subr.bf16.mxu0 %v2332_v12  ;;  %1964 = vmatmul.mubr.msk.bf16.gmra.mrb[4].mxu0 %vm100_vm0, %v2079_v7  ;;  %v2488_v7 = vld [vmem:[%s3012_s1 + $0x10] sm:$0xff] }
  0x16   :  { %165 = vmatprep.mubr.bf16.mxu0 %v2218_v1  ;;  %vm493_vm4 = vcmp.gt.f32.partialorder %v2488_v7, 0.5 }
  0x17   :  { %340 = vmatpush1.bf16.msra.mxu1 %v2305_v6 }
  0x18   :  { %341 = vmatprep.subr.bf16.mxu1 %v2317_v9  ;;  %429 = vmatpush1.bf16.msra.mxu0 %v2339_v13 }
  0x19   :  { %592 = vmatprep.subr.bf16.mxu0 %v2280_v0 }
  0x1b   :  { %342 = vmatpush1.bf16.msra.mxu1 %v2323_v10 }
  0x1c   :  { %343 = vmatprep.subr.bf16.mxu1 %v2332_v12 }
  0x1d   :  { %1965 = vmatmul.mubr.msk.bf16.gmra.mrb[8].mxu0 %vm100_vm0, %v2080_v8 }
  0x1e   :  { %175 = vmatprep.mubr.bf16.mxu0 %v2218_v1 }
  0x1f   :  { %344 = vmatpush1.bf16.msra.mxu1 %v2339_v13 }
  0x20   :  { %507 = vmatprep.subr.bf16.mxu1 %v2280_v0 }
  0x25   :  { %1966 = vmatmul.mubr.msk.bf16.gmra.mrb[12].mxu0 %vm100_vm0, %v2081_v11 }
  0x26   :  { %454 = vmatprep.mubr.bf16.mxu0 %v2218_v1 }
  0xde   :  { %v147_v20 = vpop.f32.mrb[0].mxu0 }
  0xdf   :  { %v149_v22 = vpop.f32.mrb[1].mxu0  ;;  %v148_v24 = vadd.f32 %v147_v20, %v2373_v19 }
  0xe0   :  { %v151_v23 = vpop.f32.mrb[2].mxu0  ;;  %v150_v26 = vadd.f32 %v149_v22, %v2377_v21 }
  0xe1   :  { %v153_v25 = vpop.f32.mrb[3].mxu0  ;;  %v152_v52 = vadd.f32 %v151_v23, %v2373_v19 }
  0xe2   :  { %v154_v53 = vadd.f32 %v153_v25, %v2377_v21 }
  0xe5   :  { %v290_v27 = vpop.f32.mrb[0].mxu1 }
  0xe6   :  { %v297_v28 = vadd.f32 %v290_v27, %v148_v24  ;;  %v292_v29 = vpop.f32.mrb[1].mxu1 }
  0xe7   :  { %v298_v30 = vadd.f32 %v292_v29, %v150_v26  ;;  %v294_v31 = vpop.f32.mrb[2].mxu1 }
  0xe8   :  { %v295_v32 = vpop.f32.mrb[3].mxu1  ;;  %v157_v24 = vpop.f32.mrb[4].mxu0  ;;  %v2447_v31 = vld [vmem:[%s3012_s1 + $0x8] sm:$0xff] }
  0xe9   :  { %2122 = vtanh.f32 %v298_v30  ;;  %v159_v25 = vpop.f32.mrb[5].mxu0  ;;  %vm408_vm3 = vcmp.gt.f32.partialorder %v2447_v31, 0.5 }
  0xea   :  { %2124 = vtanh.f32 %v297_v28  ;;  %v2434_v26 = vpop.f32.mrb[6].mxu0 }
  0xeb   :  { %v2436_v27 = vpop.f32.mrb[7].mxu0 }
  0xf0   :  { %v2438_v28 = vpop.f32.mrb[8].mxu0 }
  0xf1   :  { %v2440_v29 = vpop.f32.mrb[9].mxu0 }
  0xf2   :  { %v2442_v30 = vpop.f32.mrb[10].mxu0 }
  0xf3   :  { %v2123_v33 = vpop.eup %2122  ;;  %v2449_v32 = vpop.f32.mrb[11].mxu0 }
  0xf4   :  { %307 = vrot.lane.b32.xlu0 %v2123_v33, %s2219_s4  ;;  %v2125_v34 = vpop.eup %2124  ;;  %v302_v43 = vmul.f32 0.5, %v2123_v33 }
  0xf5   :  { %v301_v35 = vmul.f32 0.5, %v2125_v34 }
  0xf6   :  { %v304_v45 = vadd.f32 0.5, %v302_v43 }
  0xf7   :  { %v303_v36 = vadd.f32 0.5, %v301_v35 }
  0xf9   :  { %v305_v39 = vmul.f32 0.0, %v303_v36 }
 0x166   :  { %v308_v37 = vpop.permute.xlu0 %307 }
 0x167   :  { %v310_v38 = vmul.f32 %v308_v37, %v303_v36 }
 0x169   :  { %312 = vrot.lane.b32.xlu0 %v310_v38, %s2219_s4 }
 0x1db   :  { %v313_v40 = vpop.permute.xlu0 %312 }
 0x1dc   :  { %v315_v41 = vadd.f32 %v313_v40, %v305_v39 }
 0x1de   :  { %2126 = vtanh.f32 %v315_v41 }
 0x1e8   :  { %v2127_v42 = vpop.eup %2126 }
 0x1e9   :  { %318 = vrot.lane.b32.xlu1 %v2127_v42, %s2219_s4 }
 0x1ed   :  { %326 = vrot.lane.b32.xlu1 %v315_v41, %s2219_s4  ;;  %v2471_v41 = vpop.f32.mrb[12].mxu0 }
 0x1ee   :  { %v2473_v42 = vpop.f32.mrb[13].mxu0 }
 0x1ef   :  { %v2475_v43 = vpop.f32.mrb[14].mxu0 }
 0x25b   :  { %v319_v46 = vpop.permute.xlu1 %318 }
 0x25c   :  { %v2391_v47 = vmul.f32 %v319_v46, %v304_v45  ;;  %v2477_v45 = vpop.f32.mrb[15].mxu0  ;;  %v158_v46 = vadd.f32 %v157_v24, %v2373_v19 }
 0x25e   :  { %v2396_v48 = vsel %vm323_vm1, %v2391_v47, 0.0 }
 0x25f   :  { %v333_v49 = vpack.c.bf16 %v2396_v48, %v2396_v48  ;;  %v327_v50 = vpop.permute.xlu1 %326 }
 0x260   :  { %v329_v51 = vsel %vm323_vm1, %v327_v50, 0.0 }
 0x261   :  { %1975 = vmatmul.mubr.msk.bf16.vlgmr.msra.gmra.mrb[4].mxu1 %vm252_vm2, %v333_v49  ;;  %387 = vrot.lane.b32.xlu1 %v329_v51, %s2219_s4 }
 0x262   :  { %508 = vmatpush1.bf16.msra.mxu1 %v2287_v2  ;;  %539 = vmatprep.mubr.bf16.mxu1 %v2218_v1 }
 0x263   :  { %509 = vmatprep.subr.bf16.mxu1 %v2300_v5 }
 0x266   :  { %510 = vmatpush1.bf16.msra.mxu1 %v2305_v6 }
 0x267   :  { %511 = vmatprep.subr.bf16.mxu1 %v2317_v9 }
 0x26a   :  { %512 = vmatpush1.bf16.msra.mxu1 %v2323_v10 }
 0x26b   :  { %513 = vmatprep.subr.bf16.mxu1 %v2332_v12 }
 0x26e   :  { %514 = vmatpush1.bf16.msra.mxu1 %v2339_v13 }
 0x26f   :  { %677 = vmatprep.subr.bf16.mxu1 %v2280_v0 }
 0x2d3   :  { %v388_v14 = vpop.permute.xlu1 %387 }
 0x334   :  { %v371_v54 = vpop.f32.mrb[4].mxu1 }
 0x335   :  { %v378_v55 = vadd.f32 %v371_v54, %v152_v52  ;;  %v373_v56 = vpop.f32.mrb[5].mxu1 }
 0x336   :  { %v379_v57 = vadd.f32 %v373_v56, %v154_v53  ;;  %v375_v58 = vpop.f32.mrb[6].mxu1 }
 0x337   :  { %v376_v59 = vpop.f32.mrb[7].mxu1 }
 0x338   :  { %2128 = vtanh.f32 %v379_v57 }
 0x339   :  { %2130 = vtanh.f32 %v378_v55 }
 0x342   :  { %v2129_v60 = vpop.eup %2128 }
 0x343   :  { %392 = vrot.lane.b32.xlu0 %v2129_v60, %s2219_s4  ;;  %v2131_v61 = vpop.eup %2130  ;;  %v383_v35 = vmul.f32 0.5, %v2129_v60 }
 0x344   :  { %v382_v62 = vmul.f32 0.5, %v2131_v61 }
 0x345   :  { %v385_v36 = vadd.f32 0.5, %v383_v35 }
 0x346   :  { %v384_v63 = vadd.f32 0.5, %v382_v62 }
 0x348   :  { %v390_v17 = vmul.f32 %v388_v14, %v384_v63 }
 0x3b5   :  { %v393_v3 = vpop.permute.xlu0 %392 }
 0x3b6   :  { %v395_v4 = vmul.f32 %v393_v3, %v384_v63 }
 0x3b8   :  { %397 = vrot.lane.b32.xlu0 %v395_v4, %s2219_s4 }
 0x42a   :  { %v398_v20 = vpop.permute.xlu0 %397 }
 0x42b   :  { %v400_v22 = vadd.f32 %v398_v20, %v390_v17 }
 0x42d   :  { %2132 = vtanh.f32 %v400_v22  ;;  %411 = vrot.lane.b32.xlu0 %v400_v22, %s2219_s4 }
 0x437   :  { %v2133_v23 = vpop.eup %2132 }
 0x438   :  { %403 = vrot.lane.b32.xlu1 %v2133_v23, %s2219_s4 }
 0x49f   :  { %v412_v33 = vpop.permute.xlu0 %411 }
 0x4a0   :  { %v414_v34 = vsel %vm408_vm3, %v412_v33, %v329_v51  ;;  %v164_v33 = vadd.f32 %v2436_v27, %v2377_v21 }
 0x4a1   :  { %472 = vrot.lane.b32.xlu0 %v414_v34, %s2219_s4 }
 0x4aa   :  { %v404_v37 = vpop.permute.xlu1 %403 }
 0x4ab   :  { %v2455_v38 = vmul.f32 %v404_v37, %v385_v36 }
 0x4ad   :  { %v409_v39 = vsel %vm408_vm3, %v2455_v38, %v2396_v48  ;;  %v160_v48 = vadd.f32 %v159_v25, %v2377_v21  ;;  %v162_v25 = vadd.f32 %v2434_v26, %v2373_v19 }
 0x4ae   :  { %v418_v40 = vpack.c.bf16 %v409_v39, %v409_v39 }
 0x4b0   :  { %1976 = vmatmul.mubr.msk.bf16.vlgmr.msra.gmra.mrb[16].mxu0 %vm252_vm2, %v418_v40 }
 0x4b1   :  { %593 = vmatpush1.bf16.msra.mxu0 %v2287_v2  ;;  %624 = vmatprep.mubr.bf16.mxu0 %v2218_v1 }
 0x4b2   :  { %594 = vmatprep.subr.bf16.mxu0 %v2300_v5 }
 0x4b5   :  { %595 = vmatpush1.bf16.msra.mxu0 %v2305_v6 }
 0x4b6   :  { %596 = vmatprep.subr.bf16.mxu0 %v2317_v9 }
 0x4b9   :  { %597 = vmatpush1.bf16.msra.mxu0 %v2323_v10 }
 0x4ba   :  { %598 = vmatprep.subr.bf16.mxu0 %v2332_v12 }
 0x4bd   :  { %599 = vmatpush1.bf16.msra.mxu0 %v2339_v13 }
 0x4be   :  { %762 = vmatprep.subr.bf16.mxu0 %v2280_v0 }
 0x513   :  { %v473_v61 = vpop.permute.xlu0 %472 }
 0x583   :  { %v456_v49 = vpop.f32.mrb[16].mxu0 }
 0x584   :  { %v463_v50 = vadd.f32 %v456_v49, %v158_v46  ;;  %v458_v51 = vpop.f32.mrb[17].mxu0 }
 0x585   :  { %v464_v52 = vadd.f32 %v458_v51, %v160_v48  ;;  %v460_v53 = vpop.f32.mrb[18].mxu0 }
 0x586   :  { %v461_v54 = vpop.f32.mrb[19].mxu0 }
 0x587   :  { %2134 = vtanh.f32 %v464_v52 }
 0x588   :  { %2136 = vtanh.f32 %v463_v50 }
 0x591   :  { %v2135_v55 = vpop.eup %2134 }
 0x592   :  { %477 = vrot.lane.b32.xlu1 %v2135_v55, %s2219_s4  ;;  %v2137_v56 = vpop.eup %2136  ;;  %v468_v14 = vmul.f32 0.5, %v2135_v55  ;;  %v2520_v55 = vld [vmem:[%s3012_s1 + $0x18] sm:$0xff] }
 0x593   :  { %v467_v57 = vmul.f32 0.5, %v2137_v56  ;;  %vm578_vm5 = vcmp.gt.f32.partialorder %v2520_v55, 0.5 }
 0x594   :  { %v470_v17 = vadd.f32 0.5, %v468_v14 }
 0x595   :  { %v469_v58 = vadd.f32 0.5, %v467_v57 }
 0x597   :  { %v475_v62 = vmul.f32 %v473_v61, %v469_v58 }
 0x604   :  { %v478_v59 = vpop.permute.xlu1 %477 }
 0x605   :  { %v480_v60 = vmul.f32 %v478_v59, %v469_v58 }
 0x607   :  { %482 = vrot.lane.b32.xlu1 %v480_v60, %s2219_s4 }
 0x679   :  { %v483_v63 = vpop.permute.xlu1 %482 }
 0x67a   :  { %v485_v3 = vadd.f32 %v483_v63, %v475_v62 }
 0x67c   :  { %2138 = vtanh.f32 %v485_v3  ;;  %496 = vrot.lane.b32.xlu1 %v485_v3, %s2219_s4  ;;  %v168_v3 = vadd.f32 %v2438_v28, %v2373_v19 }
 0x686   :  { %v2139_v4 = vpop.eup %2138 }
 0x687   :  { %488 = vrot.lane.b32.xlu0 %v2139_v4, %s2219_s4  ;;  %v170_v4 = vadd.f32 %v2440_v29, %v2377_v21 }
 0x6ee   :  { %v497_v8 = vpop.permute.xlu1 %496 }
 0x6ef   :  { %v499_v11 = vsel %vm493_vm4, %v497_v8, %v414_v34 }
 0x6f0   :  { %557 = vrot.lane.b32.xlu1 %v499_v11, %s2219_s4 }
 0x6f9   :  { %v489_v20 = vpop.permute.xlu0 %488 }
 0x6fa   :  { %v2494_v22 = vmul.f32 %v489_v20, %v470_v17 }
 0x6fc   :  { %v494_v23 = vsel %vm493_vm4, %v2494_v22, %v409_v39 }
 0x6fd   :  { %v503_v24 = vpack.c.bf16 %v494_v23, %v494_v23 }
 0x6ff   :  { %1977 = vmatmul.mubr.msk.bf16.vlgmr.msra.gmra.mrb[8].mxu1 %vm252_vm2, %v503_v24 }
 0x700   :  { %678 = vmatpush1.bf16.msra.mxu1 %v2287_v2  ;;  %709 = vmatprep.mubr.bf16.mxu1 %v2218_v1 }
 0x701   :  { %679 = vmatprep.subr.bf16.mxu1 %v2300_v5 }
 0x704   :  { %680 = vmatpush1.bf16.msra.mxu1 %v2305_v6 }
 0x705   :  { %681 = vmatprep.subr.bf16.mxu1 %v2317_v9 }
 0x708   :  { %682 = vmatpush1.bf16.msra.mxu1 %v2323_v10 }
 0x709   :  { %683 = vmatprep.subr.bf16.mxu1 %v2332_v12 }
 0x70c   :  { %684 = vmatpush1.bf16.msra.mxu1 %v2339_v13 }
 0x70d   :  { %847 = vmatprep.subr.bf16.mxu1 %v2280_v0 }
 0x762   :  { %v558_v26 = vpop.permute.xlu1 %557 }
 0x7d2   :  { %v541_v34 = vpop.f32.mrb[8].mxu1 }
 0x7d3   :  { %v548_v35 = vadd.f32 %v541_v34, %v162_v25  ;;  %v543_v36 = vpop.f32.mrb[9].mxu1 }
 0x7d4   :  { %v549_v37 = vadd.f32 %v543_v36, %v164_v33  ;;  %v545_v39 = vpop.f32.mrb[10].mxu1 }
 0x7d5   :  { %v546_v40 = vpop.f32.mrb[11].mxu1 }
 0x7d6   :  { %2140 = vtanh.f32 %v549_v37 }
 0x7d7   :  { %2142 = vtanh.f32 %v548_v35 }
 0x7e0   :  { %v2141_v46 = vpop.eup %2140 }
 0x7e1   :  { %562 = vrot.lane.b32.xlu0 %v2141_v46, %s2219_s4  ;;  %v2143_v48 = vpop.eup %2142  ;;  %v553_v58 = vmul.f32 0.5, %v2141_v46  ;;  %v2551_v46 = vld [vmem:[%s3012_s1 + $0x20] sm:$0xff] }
 0x7e2   :  { %v552_v49 = vmul.f32 0.5, %v2143_v48  ;;  %vm663_vm6 = vcmp.gt.f32.partialorder %v2551_v46, 0.5 }
 0x7e3   :  { %v555_v59 = vadd.f32 0.5, %v553_v58 }
 0x7e4   :  { %v554_v0 = vadd.f32 0.5, %v552_v49 }
 0x7e6   :  { %v560_v27 = vmul.f32 %v558_v26, %v554_v0 }
 0x853   :  { %v563_v50 = vpop.permute.xlu0 %562 }
 0x854   :  { %v565_v51 = vmul.f32 %v563_v50, %v554_v0 }
 0x856   :  { %567 = vrot.lane.b32.xlu0 %v565_v51, %s2219_s4 }
 0x8c8   :  { %v568_v52 = vpop.permute.xlu0 %567 }
 0x8c9   :  { %v570_v53 = vadd.f32 %v568_v52, %v560_v27 }
 0x8cb   :  { %2144 = vtanh.f32 %v570_v53  ;;  %581 = vrot.lane.b32.xlu0 %v570_v53, %s2219_s4  ;;  %v172_v53 = vadd.f32 %v2442_v30, %v2373_v19 }
 0x8d5   :  { %v2145_v54 = vpop.eup %2144 }
 0x8d6   :  { %573 = vrot.lane.b32.xlu1 %v2145_v54, %s2219_s4 }
 0x93d   :  { %v582_v56 = vpop.permute.xlu0 %581 }
 0x93e   :  { %v584_v57 = vsel %vm578_vm5, %v582_v56, %v499_v11 }
 0x93f   :  { %642 = vrot.lane.b32.xlu0 %v584_v57, %s2219_s4 }
 0x948   :  { %v574_v60 = vpop.permute.xlu1 %573 }
 0x949   :  { %v2526_v61 = vmul.f32 %v574_v60, %v555_v59 }
 0x94b   :  { %v579_v62 = vsel %vm578_vm5, %v2526_v61, %v494_v23 }
 0x94c   :  { %v588_v63 = vpack.c.bf16 %v579_v62, %v579_v62 }
 0x94e   :  { %1978 = vmatmul.mubr.msk.bf16.vlgmr.msra.gmra.mrb[20].mxu0 %vm252_vm2, %v588_v63 }
 0x94f   :  { %763 = vmatpush1.bf16.msra.mxu0 %v2287_v2  ;;  %794 = vmatprep.mubr.bf16.mxu0 %v2218_v1 }
 0x950   :  { %764 = vmatprep.subr.bf16.mxu0 %v2300_v5 }
 0x953   :  { %765 = vmatpush1.bf16.msra.mxu0 %v2305_v6 }
 0x954   :  { %766 = vmatprep.subr.bf16.mxu0 %v2317_v9 }
 0x957   :  { %767 = vmatpush1.bf16.msra.mxu0 %v2323_v10 }
 0x958   :  { %768 = vmatprep.subr.bf16.mxu0 %v2332_v12 }
 0x95b   :  { %769 = vmatpush1.bf16.msra.mxu0 %v2339_v13 }
 0x9b1   :  { %v643_v28 = vpop.permute.xlu0 %642 }
 0xa21   :  { %v626_v8 = vpop.f32.mrb[20].mxu0 }
 0xa22   :  { %v633_v11 = vadd.f32 %v626_v8, %v168_v3  ;;  %v628_v14 = vpop.f32.mrb[21].mxu0 }
 0xa23   :  { %v634_v17 = vadd.f32 %v628_v14, %v170_v4  ;;  %v630_v20 = vpop.f32.mrb[22].mxu0  ;;  %v2582_v4 = vld [vmem:[%s3012_s1 + $0x28] sm:$0xff] }
 0xa24   :  { %v631_v23 = vpop.f32.mrb[23].mxu0  ;;  %vm748_vm7 = vcmp.gt.f32.partialorder %v2582_v4, 0.5 }
 0xa25   :  { %2146 = vtanh.f32 %v634_v17 }
 0xa26   :  { %2148 = vtanh.f32 %v633_v11 }
 0xa2f   :  { %v2147_v24 = vpop.eup %2146 }
 0xa30   :  { %647 = vrot.lane.b32.xlu1 %v2147_v24, %s2219_s4  ;;  %v2149_v25 = vpop.eup %2148  ;;  %v638_v0 = vmul.f32 0.5, %v2147_v24 }
 0xa31   :  { %v637_v33 = vmul.f32 0.5, %v2149_v25 }
 0xa32   :  { %v640_v50 = vadd.f32 0.5, %v638_v0 }
 0xa33   :  { %v639_v34 = vadd.f32 0.5, %v637_v33  ;;  %v178_v33 = vadd.f32 %v2471_v41, %v2373_v19 }
 0xa35   :  { %v645_v29 = vmul.f32 %v643_v28, %v639_v34 }
 0xaa2   :  { %v648_v35 = vpop.permute.xlu1 %647 }
 0xaa3   :  { %v650_v36 = vmul.f32 %v648_v35, %v639_v34  ;;  %v180_v34 = vadd.f32 %v2473_v42, %v2377_v21 }
 0xaa5   :  { %652 = vrot.lane.b32.xlu1 %v650_v36, %s2219_s4 }
 0xb17   :  { %v653_v37 = vpop.permute.xlu1 %652 }
 0xb18   :  { %v655_v39 = vadd.f32 %v653_v37, %v645_v29 }
 0xb1a   :  { %2150 = vtanh.f32 %v655_v39  ;;  %666 = vrot.lane.b32.xlu1 %v655_v39, %s2219_s4 }
 0xb24   :  { %v2151_v40 = vpop.eup %2150 }
 0xb25   :  { %658 = vrot.lane.b32.xlu0 %v2151_v40, %s2219_s4 }
 0xb8c   :  { %v667_v48 = vpop.permute.xlu1 %666 }
 0xb8d   :  { %v669_v49 = vsel %vm663_vm6, %v667_v48, %v584_v57 }
 0xb8e   :  { %727 = vrot.lane.b32.xlu1 %v669_v49, %s2219_s4 }
 0xb97   :  { %v659_v51 = vpop.permute.xlu0 %658 }
 0xb98   :  { %v2557_v26 = vmul.f32 %v659_v51, %v640_v50 }
 0xb9a   :  { %v664_v27 = vsel %vm663_vm6, %v2557_v26, %v579_v62 }
 0xb9b   :  { %v673_v52 = vpack.c.bf16 %v664_v27, %v664_v27 }
 0xb9d   :  { %1979 = vmatmul.mubr.msk.bf16.vlgmr.msra.gmra.mrb[12].mxu1 %vm252_vm2, %v673_v52 }
 0xb9e   :  { %848 = vmatpush1.bf16.msra.mxu1 %v2287_v2  ;;  %879 = vmatprep.mubr.bf16.mxu1 %v2218_v1  ;;  %v174_v2 = vadd.f32 %v2449_v32, %v2377_v21 }
 0xb9f   :  { %849 = vmatprep.subr.bf16.mxu1 %v2300_v5 }
 0xba2   :  { %850 = vmatpush1.bf16.msra.mxu1 %v2305_v6 }
 0xba3   :  { %851 = vmatprep.subr.bf16.mxu1 %v2317_v9 }
 0xba6   :  { %852 = vmatpush1.bf16.msra.mxu1 %v2323_v10 }
 0xba7   :  { %853 = vmatprep.subr.bf16.mxu1 %v2332_v12 }
 0xbaa   :  { %854 = vmatpush1.bf16.msra.mxu1 %v2339_v13 }
 0xc00   :  { %v728_v30 = vpop.permute.xlu1 %727 }
 0xc70   :  { %v711_v54 = vpop.f32.mrb[12].mxu1 }
 0xc71   :  { %v718_v56 = vadd.f32 %v711_v54, %v172_v53  ;;  %v713_v57 = vpop.f32.mrb[13].mxu1 }
 0xc72   :  { %v719_v5 = vadd.f32 %v713_v57, %v174_v2  ;;  %v715_v58 = vpop.f32.mrb[14].mxu1  ;;  %v2606_v2 = vld [vmem:[%s3012_s1 + $0x30] sm:$0xff] }
 0xc73   :  { %v716_v6 = vpop.f32.mrb[15].mxu1  ;;  %vm833_vm8 = vcmp.gt.f32.partialorder %v2606_v2, 0.5 }
 0xc74   :  { %2152 = vtanh.f32 %v719_v5 }
 0xc75   :  { %2154 = vtanh.f32 %v718_v56 }
 0xc7e   :  { %v2153_v9 = vpop.eup %2152 }
 0xc7f   :  { %732 = vrot.lane.b32.xlu0 %v2153_v9, %s2219_s4  ;;  %v2155_v10 = vpop.eup %2154  ;;  %v723_v14 = vmul.f32 0.5, %v2153_v9 }
 0xc80   :  { %v722_v12 = vmul.f32 0.5, %v2155_v10 }
 0xc81   :  { %v725_v17 = vadd.f32 0.5, %v723_v14 }
 0xc82   :  { %v724_v13 = vadd.f32 0.5, %v722_v12  ;;  %v182_v12 = vadd.f32 %v2475_v43, %v2373_v19 }
 0xc84   :  { %v730_v32 = vmul.f32 %v728_v30, %v724_v13 }
 0xcf1   :  { %v733_v59 = vpop.permute.xlu0 %732 }
 0xcf2   :  { %v735_v60 = vmul.f32 %v733_v59, %v724_v13  ;;  %v184_v13 = vadd.f32 %v2477_v45, %v2377_v21 }
 0xcf4   :  { %737 = vrot.lane.b32.xlu0 %v735_v60, %s2219_s4 }
 0xd66   :  { %v738_v62 = vpop.permute.xlu0 %737 }
 0xd67   :  { %v740_v63 = vadd.f32 %v738_v62, %v730_v32 }
 0xd69   :  { %2156 = vtanh.f32 %v740_v63  ;;  %751 = vrot.lane.b32.xlu0 %v740_v63, %s2219_s4 }
 0xd73   :  { %v2157_v3 = vpop.eup %2156 }
 0xd74   :  { %743 = vrot.lane.b32.xlu1 %v2157_v3, %s2219_s4 }
 0xddb   :  { %v752_v8 = vpop.permute.xlu0 %751 }
 0xddc   :  { %v754_v11 = vsel %vm748_vm7, %v752_v8, %v669_v49 }
 0xddd   :  { %812 = vrot.lane.b32.xlu0 %v754_v11, %s2219_s4 }
 0xde6   :  { %v744_v20 = vpop.permute.xlu1 %743 }
 0xde7   :  { %v2588_v23 = vmul.f32 %v744_v20, %v725_v17 }
 0xde9   :  { %v749_v24 = vsel %vm748_vm7, %v2588_v23, %v664_v27 }
 0xdea   :  { %v758_v25 = vpack.c.bf16 %v749_v24, %v749_v24 }
 0xdec   :  { %1980 = vmatmul.mubr.msk.bf16.vlgmr.msra.gmra.mrb[24].mxu0 %vm252_vm2, %v758_v25  ;;  %v2084_v25 = vld [vmem:[%s3013_s5 + $0x4] ss:$8 sps:$4 sm:$0xff]  }
 0xded   :  { %1103 = vmatprep.mubr.bf16.mxu0 %v2218_v1  ;;  %1071 = vmatprep.subr.bf16.mxu0 %v2084_v25 }
 0xe4f   :  { %v813_v41 = vpop.permute.xlu0 %812 }
 0xebf   :  { %v796_v35 = vpop.f32.mrb[24].mxu0 }
 0xec0   :  { %v803_v36 = vadd.f32 %v796_v35, %v178_v33  ;;  %v798_v28 = vpop.f32.mrb[25].mxu0  ;;  %v2087_v33 = vld [vmem:[%s3013_s5 + $0x14] ss:$8 sps:$4 sm:$0xff]  }
 0xec1   :  { %v804_v29 = vadd.f32 %v798_v28, %v180_v34  ;;  %v800_v37 = vpop.f32.mrb[26].mxu0  ;;  %v2085_v34 = vld [vmem:[%s3013_s5 + $0x10] ss:$8 sps:$4 sm:$0xff]   ;;  %v2644_v28 = vld [vmem:[%s3014_s6 + $0x4] ss:$8 sps:$4 sm:$0xff]  }
 0xec2   :  { %v801_v39 = vpop.f32.mrb[27].mxu0  ;;  %v2652_v37 = vld [vmem:[%s3014_s6] ss:$8 sps:$4 sm:$0xff]   ;;  %1210 = vmatprep.subr.bf16.mxu1 %v2644_v28 }
 0xec3   :  { %2158 = vtanh.f32 %v804_v29  ;;  %v2088_v29 = vld [vmem:[%s3013_s5 + $0x20] ss:$8 sps:$4 sm:$0xff]   ;;  %v2658_v39 = vld [vmem:[%s3014_s6 + $0x14] ss:$8 sps:$4 sm:$0xff]  }
 0xec4   :  { %2160 = vtanh.f32 %v803_v36  ;;  %v2090_v36 = vld [vmem:[%s3013_s5 + $0x24] ss:$8 sps:$4 sm:$0xff]  }
 0xecd   :  { %v2159_v40 = vpop.eup %2158 }
 0xece   :  { %817 = vrot.lane.b32.xlu1 %v2159_v40, %s2219_s4  ;;  %v2161_v48 = vpop.eup %2160  ;;  %v808_v57 = vmul.f32 0.5, %v2159_v40  ;;  %v2093_v40 = vld [vmem:[%s3013_s5 + $0x34] ss:$8 sps:$4 sm:$0xff]  }
 0xecf   :  { %v807_v49 = vmul.f32 0.5, %v2161_v48  ;;  %v2668_v48 = vld [vmem:[%s3014_s6 + $0x10] ss:$8 sps:$4 sm:$0xff]  }
 0xed0   :  { %v810_v5 = vadd.f32 0.5, %v808_v57  ;;  %v2715_v57 = vld [vmem:[%s3014_s6 + $0x30] ss:$8 sps:$4 sm:$0xff]  }
 0xed1   :  { %v809_v0 = vadd.f32 0.5, %v807_v49  ;;  %v2673_v49 = vld [vmem:[%s3014_s6 + $0x24] ss:$8 sps:$4 sm:$0xff]  }
 0xed3   :  { %v815_v42 = vmul.f32 %v813_v41, %v809_v0  ;;  %v2096_v41 = vld [vmem:[%s3013_s5 + $0x40] ss:$8 sps:$4 sm:$0xff]  }
 0xf40   :  { %v818_v50 = vpop.permute.xlu1 %817 }
 0xf41   :  { %v820_v51 = vmul.f32 %v818_v50, %v809_v0  ;;  %v2091_v0 = vld [vmem:[%s3013_s5 + $0x30] ss:$8 sps:$4 sm:$0xff]   ;;  %v2098_v50 = vld [vmem:[%s3013_s5 + $0x44] ss:$8 sps:$4 sm:$0xff]  }
 0xf43   :  { %822 = vrot.lane.b32.xlu1 %v820_v51, %s2219_s4  ;;  %v2685_v51 = vld [vmem:[%s3014_s6 + $0x20] ss:$8 sps:$4 sm:$0xff]  }
 0xfb5   :  { %v823_v27 = vpop.permute.xlu1 %822 }
 0xfb6   :  { %v825_v52 = vadd.f32 %v823_v27, %v815_v42  ;;  %v2104_v42 = vld [vmem:[%s3013_s5 + $0x54] ss:$8 sps:$4 sm:$0xff]   ;;  %v2102_v27 = vld [vmem:[%s3013_s5 + $0x50] ss:$8 sps:$4 sm:$0xff]  }
 0xfb8   :  { %2162 = vtanh.f32 %v825_v52  ;;  %836 = vrot.lane.b32.xlu1 %v825_v52, %s2219_s4  ;;  %v2110_v52 = vld [vmem:[%s3013_s5 + $0x64] ss:$8 sps:$4 sm:$0xff]  }
 0xfc2   :  { %v2163_v53 = vpop.eup %2162 }
 0xfc3   :  { %828 = vrot.lane.b32.xlu0 %v2163_v53, %s2219_s4  ;;  %v2108_v53 = vld [vmem:[%s3013_s5 + $0x60] ss:$8 sps:$4 sm:$0xff]  }
0x102a   :  { %v837_v54 = vpop.permute.xlu1 %836 }
0x102b   :  { %v839_v56 = vsel %vm833_vm8, %v837_v54, %v754_v11  ;;  %v2707_v54 = vld [vmem:[%s3014_s6 + $0x34] ss:$8 sps:$4 sm:$0xff]  }
0x102c   :  { %897 = vrot.lane.b32.xlu1 %v839_v56, %s2219_s4  ;;  %v2116_v56 = vld [vmem:[%s3013_s5 + $0x74] ss:$8 sps:$4 sm:$0xff]  }
0x1035   :  { %v829_v58 = vpop.permute.xlu0 %828 }
0x1036   :  { %v2612_v6 = vmul.f32 %v829_v58, %v810_v5  ;;  %v2114_v5 = vld [vmem:[%s3013_s5 + $0x70] ss:$8 sps:$4 sm:$0xff]  }
0x1038   :  { %v834_v9 = vsel %vm833_vm8, %v2612_v6, %v749_v24  ;;  %v2082_v24 = vld [vmem:[%s3013_s5] ss:$8 sps:$4 sm:$0xff]  }
0x1039   :  { %v843_v10 = vpack.c.bf16 %v834_v9, %v834_v9  ;;  %1072 = vmatpush1.bf16.msra.mxu0 %v2082_v24 }
0x103a   :  { %1073 = vmatprep.subr.bf16.mxu0 %v2087_v33 }
0x103b   :  { %1981 = vmatmul.mubr.msk.bf16.vlgmr.msra.gmra.mrb[16].mxu1 %vm252_vm2, %v843_v10  ;;  %v2730_v10 = vld [vmem:[%s3012_s1 + $0x38] sm:$0xff] }
0x103c   :  { %1242 = vmatprep.mubr.bf16.mxu1 %v2218_v1  ;;  %1211 = vmatpush1.bf16.msra.mxu1 %v2652_v37  ;;  %vm1865_vm10 = vcmp.gt.f32.partialorder %v2730_v10, 0.5 }
0x103d   :  { %1074 = vmatpush1.bf16.msra.mxu0 %v2085_v34  ;;  %1212 = vmatprep.subr.bf16.mxu1 %v2658_v39 }
0x103e   :  { %1075 = vmatprep.subr.bf16.mxu0 %v2090_v36 }
0x1040   :  { %1213 = vmatpush1.bf16.msra.mxu1 %v2668_v48 }
0x1041   :  { %1076 = vmatpush1.bf16.msra.mxu0 %v2088_v29  ;;  %1214 = vmatprep.subr.bf16.mxu1 %v2673_v49 }
0x1042   :  { %1077 = vmatprep.subr.bf16.mxu0 %v2093_v40 }
0x1044   :  { %1215 = vmatpush1.bf16.msra.mxu1 %v2685_v51 }
0x1045   :  { %1078 = vmatpush1.bf16.msra.mxu0 %v2091_v0  ;;  %1216 = vmatprep.subr.bf16.mxu1 %v2707_v54 }
0x1046   :  { %1079 = vmatprep.subr.bf16.mxu0 %v2098_v50 }
0x1048   :  { %1217 = vmatpush1.bf16.msra.mxu1 %v2715_v57 }
0x1049   :  { %1080 = vmatpush1.bf16.msra.mxu0 %v2096_v41  ;;  %1290 = vmatprep.subr.bf16.mxu1 %v2644_v28 }
0x104a   :  { %1081 = vmatprep.subr.bf16.mxu0 %v2104_v42 }
0x104b   :  { %1243 = vmatmul.mubr.bf16.vlgmr.msra.gmra.mrb[20].mxu1 %v2218_v1 }
0x104c   :  { %1291 = vmatpush1.bf16.msra.mxu1 %v2652_v37  ;;  %1322 = vmatprep.mubr.bf16.mxu1 %v2218_v1 }
0x104d   :  { %1082 = vmatpush1.bf16.msra.mxu0 %v2102_v27  ;;  %1292 = vmatprep.subr.bf16.mxu1 %v2658_v39 }
0x104e   :  { %1083 = vmatprep.subr.bf16.mxu0 %v2110_v52 }
0x1050   :  { %1293 = vmatpush1.bf16.msra.mxu1 %v2668_v48 }
0x1051   :  { %1084 = vmatpush1.bf16.msra.mxu0 %v2108_v53  ;;  %1294 = vmatprep.subr.bf16.mxu1 %v2673_v49  ;;  %v2789_v53 = vmul.f32 %v2582_v4, %v2588_v23 }
0x1052   :  { %1085 = vmatprep.subr.bf16.mxu0 %v2116_v56 }
0x1054   :  { %1295 = vmatpush1.bf16.msra.mxu1 %v2685_v51 }
0x1055   :  { %1086 = vmatpush1.bf16.msra.mxu0 %v2114_v5  ;;  %1296 = vmatprep.subr.bf16.mxu1 %v2707_v54 }
0x1056   :  { %1458 = vmatprep.subr.bf16.mxu0 %v2644_v28 }
0x1058   :  { %1297 = vmatpush1.bf16.msra.mxu1 %v2715_v57 }
0x1059   :  { %1374 = vmatprep.subr.bf16.mxu1 %v2644_v28 }
0x109e   :  { %v898_v19 = vpop.permute.xlu1 %897 }
0x110e   :  { %v881_v59 = vpop.f32.mrb[16].mxu1 }
0x110f   :  { %v888_v60 = vadd.f32 %v881_v59, %v182_v12  ;;  %v883_v30 = vpop.f32.mrb[17].mxu1  ;;  %v2735_v59 = vmul.f32 %v2606_v2, %v2612_v6 }
0x1110   :  { %v889_v32 = vadd.f32 %v883_v30, %v184_v13  ;;  %v885_v62 = vpop.f32.mrb[18].mxu1 }
0x1111   :  { %v886_v63 = vpop.f32.mrb[19].mxu1  ;;  %v2755_v62 = vmul.f32 %v2447_v31, %v2455_v38 }
0x1112   :  { %2164 = vtanh.f32 %v889_v32  ;;  %v2751_v32 = vmul.f32 %v2388_v44, %v2391_v47 }
0x1113   :  { %2166 = vtanh.f32 %v888_v60 }
0x111c   :  { %v2165_v3 = vpop.eup %2164 }
0x111d   :  { %902 = vrot.lane.b32.xlu0 %v2165_v3, %s2219_s4  ;;  %v2167_v8 = vpop.eup %2166  ;;  %v893_v58 = vmul.f32 0.5, %v2165_v3 }
0x111e   :  { %v892_v11 = vmul.f32 0.5, %v2167_v8  ;;  %v1244_v47 = vpop.f32.mrb[20].mxu1 }
0x111f   :  { %v895_v9 = vadd.f32 0.5, %v893_v58  ;;  %v1246_v38 = vpop.f32.mrb[21].mxu1  ;;  %v2797_v58 = vmul.f32 %v2551_v46, %v2557_v26 }
0x1120   :  { %v894_v14 = vadd.f32 0.5, %v892_v11 }
0x1122   :  { %v900_v21 = vmul.f32 %v898_v19, %v894_v14  ;;  %v979_v19 = vld [vmem:[%s3015_s7] sm:$0x3] }
0x118f   :  { %v903_v17 = vpop.permute.xlu0 %902 }
0x1190   :  { %v905_v20 = vmul.f32 %v903_v17, %v894_v14  ;;  %v1248_v17 = vpop.f32.mrb[22].mxu1 }
0x1192   :  { %907 = vrot.lane.b32.xlu0 %v905_v20, %s2219_s4  ;;  %v1249_v20 = vpop.f32.mrb[23].mxu1 }
0x1204   :  { %v908_v43 = vpop.permute.xlu0 %907 }
0x1205   :  { %v910_v45 = vadd.f32 %v908_v43, %v900_v21  ;;  %v2775_v21 = vrot.slane %v979_v19, %v52_v16  ;;  %v2779_v43 = vrot.slane %v979_v19, %v56_v18 }
0x1207   :  { %2168 = vtanh.f32 %v910_v45 }
0x1211   :  { %v2169_v35 = vpop.eup %2168 }
0x1212   :  { %913 = vrot.lane.b32.xlu1 %v2169_v35, %s2219_s4 }
0x1284   :  { %v914_v12 = vpop.permute.xlu1 %913 }
0x1285   :  { %v916_v13 = vmul.f32 %v914_v12, %v895_v9  ;;  %v2045_v9 = vpack.i.bf16 %v2797_v58, %v2789_v53 }
0x1287   :  { %v2738_v60 = vmul.f32 %v2730_v10, %v916_v13 }
0x1289   :  { %v2040_v30 = vpack.i.bf16 %v2735_v59, %v2738_v60 }
0x128b   :  { %2041 = vrot.lane.b32.xlu0 %v2040_v30, %s2219_s4 }
0x12fd   :  { %v2042_v6 = vpop.permute.xlu0 %2041 }
0x12fe   :  { %v2044_v63 = vunpack.i.h.bf16 %v2042_v6  ;;  %v2043_v3 = vunpack.i.l.bf16 %v2042_v6 }
0x1300   :  { %v928_v8 = vsel %vm252_vm2, %v2755_v62, %v2044_v63  ;;  %v923_v11 = vsel %vm252_vm2, %v2751_v32, %v2043_v3  ;;  %v500_v3 = vmul.f32 %v2488_v7, %v2494_v22 }
0x1301   :  { %v959_v14 = vpack.c.bf16 %v928_v8, %v923_v11  ;;  %v585_v8 = vmul.f32 %v2520_v55, %v2526_v61 }
0x1303   :  { %1104 = vmatmul.mubr.bf16.vlgmr.msra.gmra.mrb[28].mxu0 %v959_v14 }
0x1304   :  { %1113 = vmatprep.mubr.bf16.mxu0 %v2218_v1  ;;  %1459 = vmatpush1.bf16.msra.mxu0 %v2652_v37 }
0x1305   :  { %1460 = vmatprep.subr.bf16.mxu0 %v2658_v39 }
0x1308   :  { %1461 = vmatpush1.bf16.msra.mxu0 %v2668_v48 }
0x1309   :  { %1462 = vmatprep.subr.bf16.mxu0 %v2673_v49 }
0x130c   :  { %1463 = vmatpush1.bf16.msra.mxu0 %v2685_v51 }
0x130d   :  { %1464 = vmatprep.subr.bf16.mxu0 %v2707_v54 }
0x1310   :  { %1465 = vmatpush1.bf16.msra.mxu0 %v2715_v57 }
0x1311   :  { %1626 = vmatprep.subr.bf16.mxu0 %v2644_v28 }
0x13d6   :  { %v1105_v45 = vpop.f32.mrb[28].mxu0 }
0x13d7   :  { %v1106_v24 = vadd.f32 %v1105_v45, %v2775_v21  ;;  %v1107_v25 = vpop.f32.mrb[29].mxu0 }
0x13d8   :  { %v1108_v33 = vadd.f32 %v1107_v25, %v2779_v43  ;;  %v1109_v34 = vpop.f32.mrb[30].mxu0 }
0x13d9   :  { %v1251_v35 = vadd.f32 %v1244_v47, %v1106_v24  ;;  %v1111_v36 = vpop.f32.mrb[31].mxu0  ;;  %v1110_v20 = vadd.f32 %v1109_v34, %v2775_v21 }
0x13da   :  { %v1252_v29 = vadd.f32 %v1246_v38, %v1108_v33  ;;  %v1112_v19 = vadd.f32 %v1111_v36, %v2779_v43 }
0x13dc   :  { %2170 = vtanh.f32 %v1252_v29 }
0x13dd   :  { %2172 = vtanh.f32 %v1251_v35 }
0x13e6   :  { %v2171_v40 = vpop.eup %2170 }
0x13e7   :  { %1261 = vrot.lane.b32.xlu1 %v2171_v40, %s2219_s4  ;;  %v2173_v16 = vpop.eup %2172  ;;  %v1256_v12 = vmul.f32 0.5, %v2171_v40 }
0x13e8   :  { %v1255_v0 = vmul.f32 0.5, %v2173_v16 }
0x13e9   :  { %v1258_v23 = vadd.f32 0.5, %v1256_v12  ;;  %v2050_v12 = vpack.i.bf16 %v500_v3, %v585_v8 }
0x13ea   :  { %v1257_v15 = vadd.f32 0.5, %v1255_v0 }
0x13ec   :  { %v1259_v41 = vmul.f32 0.0, %v1257_v15 }
0x1459   :  { %v1262_v18 = vpop.permute.xlu1 %1261 }
0x145a   :  { %v1264_v50 = vmul.f32 %v1262_v18, %v1257_v15 }
0x145c   :  { %1266 = vrot.lane.b32.xlu0 %v1264_v50, %s2219_s4 }
0x14ce   :  { %v1267_v42 = vpop.permute.xlu0 %1266 }
0x14cf   :  { %v1269_v27 = vadd.f32 %v1267_v42, %v1259_v41 }
0x14d1   :  { %2174 = vtanh.f32 %v1269_v27  ;;  %1280 = vrot.lane.b32.xlu0 %v1269_v27, %s2219_s4 }
0x14db   :  { %v2175_v52 = vpop.eup %2174 }
0x14dc   :  { %1272 = vrot.lane.b32.xlu1 %v2175_v52, %s2219_s4 }
0x1543   :  { %v1281_v56 = vpop.permute.xlu0 %1280 }
0x1544   :  { %v2793_v5 = vsel %vm323_vm1, %v1281_v56, 0.0 }
0x1545   :  { %1340 = vrot.lane.b32.xlu0 %v2793_v5, %s2219_s4 }
0x1549   :  { %2046 = vrot.lane.b32.xlu0 %v2045_v9, %s2219_s4 }
0x154e   :  { %v1273_v13 = vpop.permute.xlu1 %1272 }
0x154f   :  { %v1275_v30 = vmul.f32 %v1273_v13, %v1258_v23 }
0x1551   :  { %v1278_v6 = vsel %vm323_vm1, %v1275_v30, 0.0 }
0x1552   :  { %v1286_v63 = vpack.c.bf16 %v1278_v6, %v1278_v6 }
0x1554   :  { %2006 = vmatmul.mubr.msk.bf16.vlgmr.msra.gmra.mrb[24].mxu1 %vm252_vm2, %v1286_v63 }
0x1555   :  { %1375 = vmatpush1.bf16.msra.mxu1 %v2652_v37  ;;  %1406 = vmatprep.mubr.bf16.mxu1 %v2218_v1 }
0x1556   :  { %1376 = vmatprep.subr.bf16.mxu1 %v2658_v39 }
0x1559   :  { %1377 = vmatpush1.bf16.msra.mxu1 %v2668_v48 }
0x155a   :  { %1378 = vmatprep.subr.bf16.mxu1 %v2673_v49 }
0x155d   :  { %1379 = vmatpush1.bf16.msra.mxu1 %v2685_v51 }
0x155e   :  { %1380 = vmatprep.subr.bf16.mxu1 %v2707_v54 }
0x1561   :  { %1381 = vmatpush1.bf16.msra.mxu1 %v2715_v57 }
0x1562   :  { %1542 = vmatprep.subr.bf16.mxu1 %v2644_v28 }
0x15b7   :  { %v1341_v44 = vpop.permute.xlu0 %1340 }
0x15bb   :  { %v2047_v26 = vpop.permute.xlu0 %2046 }
0x15bc   :  { %v2049_v11 = vunpack.i.h.bf16 %v2047_v26  ;;  %v2048_v14 = vunpack.i.l.bf16 %v2047_v26 }
0x15be   :  { %v933_v47 = vsel %vm252_vm2, %v500_v3, %v2048_v14  ;;  %v938_v38 = vsel %vm252_vm2, %v585_v8, %v2049_v11 }
0x15bf   :  { %v960_v17 = vpack.c.bf16 %v938_v38, %v933_v47 }
0x15c1   :  { %1114 = vmatmul.mubr.bf16.gmra.mrb[32].mxu0 %v960_v17 }
0x15c2   :  { %1123 = vmatprep.mubr.bf16.mxu0 %v2218_v1 }
0x1627   :  { %v1324_v45 = vpop.f32.mrb[24].mxu1 }
0x1628   :  { %v1331_v24 = vadd.f32 %v1324_v45, %v1110_v20  ;;  %v1326_v22 = vpop.f32.mrb[25].mxu1 }
0x1629   :  { %v1332_v25 = vadd.f32 %v1326_v22, %v1112_v19  ;;  %v1328_v33 = vpop.f32.mrb[26].mxu1 }
0x162a   :  { %v1329_v61 = vpop.f32.mrb[27].mxu1 }
0x162b   :  { %2176 = vtanh.f32 %v1332_v25 }
0x162c   :  { %2178 = vtanh.f32 %v1331_v24 }
0x1635   :  { %v2177_v35 = vpop.eup %2176 }
0x1636   :  { %1345 = vrot.lane.b32.xlu1 %v2177_v35, %s2219_s4  ;;  %v2179_v34 = vpop.eup %2178  ;;  %v1336_v23 = vmul.f32 0.5, %v2177_v35 }
0x1637   :  { %v1335_v15 = vmul.f32 0.5, %v2179_v34 }
0x1638   :  { %v1338_v13 = vadd.f32 0.5, %v1336_v23 }
0x1639   :  { %v1337_v36 = vadd.f32 0.5, %v1335_v15 }
0x163b   :  { %v1343_v41 = vmul.f32 %v1341_v44, %v1337_v36 }
0x1694   :  { %v1115_v29 = vpop.f32.mrb[32].mxu0 }
0x1695   :  { %v1117_v40 = vpop.f32.mrb[33].mxu0  ;;  %v1116_v47 = vadd.f32 %v1115_v29, %v2775_v21 }
0x1696   :  { %v2826_v16 = vpop.f32.mrb[34].mxu0  ;;  %v1118_v38 = vadd.f32 %v1117_v40, %v2779_v43 }
0x1697   :  { %v2828_v0 = vpop.f32.mrb[35].mxu0 }
0x16a8   :  { %v1346_v18 = vpop.permute.xlu1 %1345 }
0x16a9   :  { %v1348_v50 = vmul.f32 %v1346_v18, %v1337_v36  ;;  %v2055_v36 = vpack.i.bf16 %v2751_v32, %v2755_v62 }
0x16ab   :  { %1350 = vrot.lane.b32.xlu1 %v1348_v50, %s2219_s4 }
0x171d   :  { %v1351_v42 = vpop.permute.xlu1 %1350 }
0x171e   :  { %v1353_v27 = vadd.f32 %v1351_v42, %v1343_v41 }
0x1720   :  { %2180 = vtanh.f32 %v1353_v27  ;;  %1364 = vrot.lane.b32.xlu0 %v1353_v27, %s2219_s4 }
0x172a   :  { %v2181_v52 = vpop.eup %2180 }
0x172b   :  { %1356 = vrot.lane.b32.xlu1 %v2181_v52, %s2219_s4 }
0x1792   :  { %v1365_v56 = vpop.permute.xlu0 %1364 }
0x1793   :  { %v2836_v9 = vsel %vm408_vm3, %v1365_v56, %v2793_v5 }
0x1794   :  { %1424 = vrot.lane.b32.xlu0 %v2836_v9, %s2219_s4 }
0x1798   :  { %2051 = vrot.lane.b32.xlu0 %v2050_v12, %s2219_s4 }
0x179d   :  { %v1357_v30 = vpop.permute.xlu1 %1356 }
0x179e   :  { %v1359_v63 = vmul.f32 %v1357_v30, %v1338_v13 }
0x17a0   :  { %v2843_v44 = vsel %vm408_vm3, %v1359_v63, %v1278_v6 }
0x17a1   :  { %v1370_v26 = vpack.c.bf16 %v2843_v44, %v2843_v44 }
0x17a3   :  { %2007 = vmatmul.mubr.msk.bf16.vlgmr.msra.gmra.mrb[28].mxu1 %vm252_vm2, %v1370_v26 }
0x17a4   :  { %1543 = vmatpush1.bf16.msra.mxu1 %v2652_v37  ;;  %1574 = vmatprep.mubr.bf16.mxu1 %v2218_v1 }
0x17a5   :  { %1544 = vmatprep.subr.bf16.mxu1 %v2658_v39 }
0x17a8   :  { %1545 = vmatpush1.bf16.msra.mxu1 %v2668_v48 }
0x17a9   :  { %1546 = vmatprep.subr.bf16.mxu1 %v2673_v49 }
0x17ac   :  { %1547 = vmatpush1.bf16.msra.mxu1 %v2685_v51 }
0x17ad   :  { %1548 = vmatprep.subr.bf16.mxu1 %v2707_v54 }
0x17b0   :  { %1549 = vmatpush1.bf16.msra.mxu1 %v2715_v57 }
0x17b1   :  { %1710 = vmatprep.subr.bf16.mxu1 %v2644_v28 }
0x1806   :  { %v1425_v31 = vpop.permute.xlu0 %1424 }
0x180a   :  { %v2052_v5 = vpop.permute.xlu0 %2051 }
0x180b   :  { %v2054_v6 = vunpack.i.h.bf16 %v2052_v5  ;;  %v2053_v3 = vunpack.i.l.bf16 %v2052_v5 }
0x180d   :  { %v943_v8 = vsel %vm252_vm2, %v2797_v58, %v2053_v3  ;;  %v948_v11 = vsel %vm252_vm2, %v2789_v53, %v2054_v6  ;;  %v1120_v6 = vadd.f32 %v2826_v16, %v2775_v21  ;;  %v1122_v3 = vadd.f32 %v2828_v0, %v2779_v43 }
0x180e   :  { %v961_v14 = vpack.c.bf16 %v948_v11, %v943_v8 }
0x1810   :  { %1124 = vmatmul.mubr.bf16.gmra.mrb[36].mxu0 %v961_v14 }
0x1811   :  { %1133 = vmatprep.mubr.bf16.mxu0 %v2218_v1 }
0x1876   :  { %v1408_v17 = vpop.f32.mrb[28].mxu1 }
0x1877   :  { %v1415_v20 = vadd.f32 %v1408_v17, %v1116_v47  ;;  %v1410_v19 = vpop.f32.mrb[29].mxu1 }
0x1878   :  { %v1416_v45 = vadd.f32 %v1410_v19, %v1118_v38  ;;  %v1412_v24 = vpop.f32.mrb[30].mxu1 }
0x1879   :  { %v1413_v22 = vpop.f32.mrb[31].mxu1 }
0x187a   :  { %2182 = vtanh.f32 %v1416_v45 }
0x187b   :  { %2184 = vtanh.f32 %v1415_v20 }
0x1884   :  { %v2183_v25 = vpop.eup %2182 }
0x1885   :  { %1429 = vrot.lane.b32.xlu1 %v2183_v25, %s2219_s4  ;;  %v2185_v35 = vpop.eup %2184  ;;  %v1420_v30 = vmul.f32 0.5, %v2183_v25 }
0x1886   :  { %v1419_v29 = vmul.f32 0.5, %v2185_v35 }
0x1887   :  { %v1422_v63 = vadd.f32 0.5, %v1420_v30 }
0x1888   :  { %v1421_v40 = vadd.f32 0.5, %v1419_v29 }
0x188a   :  { %v1427_v18 = vmul.f32 %v1425_v31, %v1421_v40 }
0x18e3   :  { %v2865_v58 = vpop.f32.mrb[36].mxu0 }
0x18e4   :  { %v2867_v53 = vpop.f32.mrb[37].mxu0  ;;  %v1126_v55 = vadd.f32 %v2865_v58, %v2775_v21 }
0x18e5   :  { %v2869_v33 = vpop.f32.mrb[38].mxu0 }
0x18e6   :  { %v2871_v61 = vpop.f32.mrb[39].mxu0  ;;  %v1130_v46 = vadd.f32 %v2869_v33, %v2775_v21 }
0x18f7   :  { %v1430_v34 = vpop.permute.xlu1 %1429 }
0x18f8   :  { %v1432_v15 = vmul.f32 %v1430_v34, %v1421_v40 }
0x18fa   :  { %1434 = vrot.lane.b32.xlu1 %v1432_v15, %s2219_s4 }
0x18fe   :  { %2056 = vrot.lane.b32.xlu1 %v2055_v36, %s2219_s4 }
0x196c   :  { %v1435_v50 = vpop.permute.xlu1 %1434 }
0x196d   :  { %v1437_v41 = vadd.f32 %v1435_v50, %v1427_v18 }
0x196f   :  { %2186 = vtanh.f32 %v1437_v41  ;;  %1448 = vrot.lane.b32.xlu1 %v1437_v41, %s2219_s4 }
0x1970   :  { %v2057_v42 = vpop.permute.xlu1 %2056 }
0x1971   :  { %v2059_v27 = vunpack.i.h.bf16 %v2057_v42  ;;  %v2058_v52 = vunpack.i.l.bf16 %v2057_v42 }
0x1973   :  { %v953_v56 = vsel %vm252_vm2, %v2735_v59, %v2058_v52  ;;  %v958_v12 = vsel %vm252_vm2, %v2738_v60, %v2059_v27  ;;  %v1128_v27 = vadd.f32 %v2867_v53, %v2779_v43 }
0x1974   :  { %v962_v23 = vpack.c.bf16 %v958_v12, %v953_v56 }
0x1976   :  { %1134 = vmatmul.mubr.bf16.gmra.mrb[40].mxu0 %v962_v23 }
0x1977   :  { %1490 = vmatprep.mubr.bf16.mxu0 %v2218_v1 }
0x1979   :  { %v2187_v32 = vpop.eup %2186 }
0x197a   :  { %1440 = vrot.lane.b32.xlu0 %v2187_v32, %s2219_s4 }
0x19e1   :  { %v1449_v62 = vpop.permute.xlu1 %1448 }
0x19e2   :  { %v1451_v13 = vsel %vm493_vm4, %v1449_v62, %v2836_v9 }
0x19e3   :  { %1508 = vrot.lane.b32.xlu1 %v1451_v13, %s2219_s4 }
0x19ec   :  { %v1441_v59 = vpop.permute.xlu0 %1440 }
0x19ed   :  { %v1443_v26 = vmul.f32 %v1441_v59, %v1422_v63 }
0x19ef   :  { %v1446_v60 = vsel %vm493_vm4, %v1443_v26, %v2843_v44 }
0x19f0   :  { %v1454_v31 = vpack.c.bf16 %v1446_v60, %v1446_v60 }
0x19f2   :  { %2008 = vmatmul.mubr.msk.bf16.vlgmr.msra.gmra.mrb[44].mxu0 %vm252_vm2, %v1454_v31 }
0x19f3   :  { %1627 = vmatpush1.bf16.msra.mxu0 %v2652_v37  ;;  %1658 = vmatprep.mubr.bf16.mxu0 %v2218_v1 }
0x19f4   :  { %1628 = vmatprep.subr.bf16.mxu0 %v2658_v39 }
0x19f7   :  { %1629 = vmatpush1.bf16.msra.mxu0 %v2668_v48 }
0x19f8   :  { %1630 = vmatprep.subr.bf16.mxu0 %v2673_v49 }
0x19fb   :  { %1631 = vmatpush1.bf16.msra.mxu0 %v2685_v51 }
0x19fc   :  { %1632 = vmatprep.subr.bf16.mxu0 %v2707_v54 }
0x19ff   :  { %1633 = vmatpush1.bf16.msra.mxu0 %v2715_v57 }
0x1a00   :  { %1794 = vmatprep.subr.bf16.mxu0 %v2644_v28 }
0x1a49   :  { %v2901_v7 = vpop.f32.mrb[40].mxu0 }
0x1a4a   :  { %v2903_v9 = vpop.f32.mrb[41].mxu0 }
0x1a4b   :  { %v2905_v44 = vpop.f32.mrb[42].mxu0 }
0x1a4c   :  { %v2907_v5 = vpop.f32.mrb[43].mxu0 }
0x1a55   :  { %v1509_v16 = vpop.permute.xlu1 %1508 }
0x1ac5   :  { %v1492_v8 = vpop.f32.mrb[44].mxu0 }
0x1ac6   :  { %v1499_v11 = vadd.f32 %v1492_v8, %v1120_v6  ;;  %v1494_v14 = vpop.f32.mrb[45].mxu0 }
0x1ac7   :  { %v1500_v47 = vadd.f32 %v1494_v14, %v1122_v3  ;;  %v1496_v38 = vpop.f32.mrb[46].mxu0 }
0x1ac8   :  { %v1497_v28 = vpop.f32.mrb[47].mxu0 }
0x1ac9   :  { %2188 = vtanh.f32 %v1500_v47 }
0x1aca   :  { %2190 = vtanh.f32 %v1499_v11 }
0x1ad3   :  { %v2189_v17 = vpop.eup %2188 }
0x1ad4   :  { %1513 = vrot.lane.b32.xlu0 %v2189_v17, %s2219_s4  ;;  %v2191_v20 = vpop.eup %2190  ;;  %v1504_v15 = vmul.f32 0.5, %v2189_v17 }
0x1ad5   :  { %v1503_v19 = vmul.f32 0.5, %v2191_v20 }
0x1ad6   :  { %v1506_v36 = vadd.f32 0.5, %v1504_v15 }
0x1ad7   :  { %v1505_v45 = vadd.f32 0.5, %v1503_v19 }
0x1ad9   :  { %v1511_v0 = vmul.f32 %v1509_v16, %v1505_v45 }
0x1b46   :  { %v1514_v24 = vpop.permute.xlu0 %1513 }
0x1b47   :  { %v1516_v22 = vmul.f32 %v1514_v24, %v1505_v45 }
0x1b49   :  { %1518 = vrot.lane.b32.xlu0 %v1516_v22, %s2219_s4 }
0x1bbb   :  { %v1519_v25 = vpop.permute.xlu0 %1518 }
0x1bbc   :  { %v1521_v35 = vadd.f32 %v1519_v25, %v1511_v0 }
0x1bbe   :  { %2192 = vtanh.f32 %v1521_v35  ;;  %1532 = vrot.lane.b32.xlu0 %v1521_v35, %s2219_s4 }
0x1bc8   :  { %v2193_v29 = vpop.eup %2192 }
0x1bc9   :  { %1524 = vrot.lane.b32.xlu1 %v2193_v29, %s2219_s4 }
0x1c30   :  { %v1533_v40 = vpop.permute.xlu0 %1532 }
0x1c31   :  { %v1535_v34 = vsel %vm578_vm5, %v1533_v40, %v1451_v13 }
0x1c32   :  { %1592 = vrot.lane.b32.xlu0 %v1535_v34, %s2219_s4 }
0x1c3b   :  { %v1525_v18 = vpop.permute.xlu1 %1524 }
0x1c3c   :  { %v1527_v50 = vmul.f32 %v1525_v18, %v1506_v36 }
0x1c3e   :  { %v1530_v41 = vsel %vm578_vm5, %v1527_v50, %v1446_v60 }
0x1c3f   :  { %v1538_v42 = vpack.c.bf16 %v1530_v41, %v1530_v41 }
0x1c41   :  { %2009 = vmatmul.mubr.msk.bf16.vlgmr.msra.gmra.mrb[32].mxu1 %vm252_vm2, %v1538_v42  ;;  %v1136_v42 = vadd.f32 %v2901_v7, %v2775_v21 }
0x1c42   :  { %1711 = vmatpush1.bf16.msra.mxu1 %v2652_v37  ;;  %1742 = vmatprep.mubr.bf16.mxu1 %v2218_v1 }
0x1c43   :  { %1712 = vmatprep.subr.bf16.mxu1 %v2658_v39 }
0x1c46   :  { %1713 = vmatpush1.bf16.msra.mxu1 %v2668_v48 }
0x1c47   :  { %1714 = vmatprep.subr.bf16.mxu1 %v2673_v49 }
0x1c4a   :  { %1715 = vmatpush1.bf16.msra.mxu1 %v2685_v51 }
0x1c4b   :  { %1716 = vmatprep.subr.bf16.mxu1 %v2707_v54 }
0x1c4e   :  { %1717 = vmatpush1.bf16.msra.mxu1 %v2715_v57 }
0x1ca4   :  { %v1593_v58 = vpop.permute.xlu0 %1592 }
0x1d14   :  { %v1576_v52 = vpop.f32.mrb[32].mxu1 }
0x1d15   :  { %v1583_v56 = vadd.f32 %v1576_v52, %v1126_v55  ;;  %v1578_v12 = vpop.f32.mrb[33].mxu1  ;;  %v1138_v55 = vadd.f32 %v2903_v9, %v2779_v43 }
0x1d16   :  { %v1584_v23 = vadd.f32 %v1578_v12, %v1128_v27  ;;  %v1580_v32 = vpop.f32.mrb[34].mxu1 }
0x1d17   :  { %v1581_v62 = vpop.f32.mrb[35].mxu1 }
0x1d18   :  { %2194 = vtanh.f32 %v1584_v23 }
0x1d19   :  { %2196 = vtanh.f32 %v1583_v56 }
0x1d22   :  { %v2195_v13 = vpop.eup %2194 }
0x1d23   :  { %1597 = vrot.lane.b32.xlu1 %v2195_v13, %s2219_s4  ;;  %v2197_v30 = vpop.eup %2196  ;;  %v1588_v14 = vmul.f32 0.5, %v2195_v13 }
0x1d24   :  { %v1587_v63 = vmul.f32 0.5, %v2197_v30 }
0x1d25   :  { %v1590_v47 = vadd.f32 0.5, %v1588_v14 }
0x1d26   :  { %v1589_v59 = vadd.f32 0.5, %v1587_v63 }
0x1d28   :  { %v1595_v53 = vmul.f32 %v1593_v58, %v1589_v59 }
0x1d95   :  { %v1598_v26 = vpop.permute.xlu1 %1597 }
0x1d96   :  { %v1600_v60 = vmul.f32 %v1598_v26, %v1589_v59 }
0x1d98   :  { %1602 = vrot.lane.b32.xlu1 %v1600_v60, %s2219_s4 }
0x1e0a   :  { %v1603_v31 = vpop.permute.xlu1 %1602 }
0x1e0b   :  { %v1605_v6 = vadd.f32 %v1603_v31, %v1595_v53 }
0x1e0d   :  { %2198 = vtanh.f32 %v1605_v6  ;;  %1616 = vrot.lane.b32.xlu1 %v1605_v6, %s2219_s4 }
0x1e17   :  { %v2199_v3 = vpop.eup %2198 }
0x1e18   :  { %1608 = vrot.lane.b32.xlu0 %v2199_v3, %s2219_s4 }
0x1e7f   :  { %v1617_v8 = vpop.permute.xlu1 %1616 }
0x1e80   :  { %v1619_v11 = vsel %vm663_vm6, %v1617_v8, %v1535_v34 }
0x1e81   :  { %1676 = vrot.lane.b32.xlu1 %v1619_v11, %s2219_s4 }
0x1e8a   :  { %v1609_v38 = vpop.permute.xlu0 %1608 }
0x1e8b   :  { %v1611_v28 = vmul.f32 %v1609_v38, %v1590_v47  ;;  %v1140_v38 = vadd.f32 %v2905_v44, %v2775_v21  ;;  %v2220_v21 = vmov 0.0   ;;  %v2119_v44 = vld [vmem:[%s3016_s8 + $0x8] sm:$0xff]  }
0x1e8c   :  { %2024 = vmatprep.subr.bf16.mxu1 %v2220_v21 }
0x1e8d   :  { %v1614_v17 = vsel %vm663_vm6, %v1611_v28, %v1530_v41  ;;  %v1142_v28 = vadd.f32 %v2907_v5, %v2779_v43  ;;  %v2120_v5 = vld [vmem:[%s3016_s8 + $0x10] sm:$0xff]  }
0x1e8e   :  { %v1622_v20 = vpack.c.bf16 %v1614_v17, %v1614_v17 }
0x1e90   :  { %2010 = vmatmul.mubr.msk.bf16.vlgmr.msra.gmra.mrb[48].mxu0 %vm252_vm2, %v1622_v20 }
0x1e91   :  { %1795 = vmatpush1.bf16.msra.mxu0 %v2652_v37  ;;  %1826 = vmatprep.mubr.bf16.mxu0 %v2218_v1  ;;  %v1132_v37 = vadd.f32 %v2871_v61, %v2779_v43  ;;  %v2118_v43 = vld [vmem:[%s3016_s8] sm:$0xff]  }
0x1e92   :  { %1796 = vmatprep.subr.bf16.mxu0 %v2658_v39 }
0x1e95   :  { %1797 = vmatpush1.bf16.msra.mxu0 %v2668_v48 }
0x1e96   :  { %1798 = vmatprep.subr.bf16.mxu0 %v2673_v49 }
0x1e99   :  { %1799 = vmatpush1.bf16.msra.mxu0 %v2685_v51 }
0x1e9a   :  { %1800 = vmatprep.subr.bf16.mxu0 %v2707_v54 }
0x1e9d   :  { %1801 = vmatpush1.bf16.msra.mxu0 %v2715_v57 }
0x1ef3   :  { %v1677_v33 = vpop.permute.xlu1 %1676 }
0x1f63   :  { %v1660_v19 = vpop.f32.mrb[48].mxu0 }
0x1f64   :  { %v1667_v1 = vadd.f32 %v1660_v19, %v1130_v46  ;;  %v1662_v45 = vpop.f32.mrb[49].mxu0 }
0x1f65   :  { %v1668_v39 = vadd.f32 %v1662_v45, %v1132_v37  ;;  %v1664_v24 = vpop.f32.mrb[50].mxu0 }
0x1f66   :  { %v1665_v48 = vpop.f32.mrb[51].mxu0 }
0x1f67   :  { %2200 = vtanh.f32 %v1668_v39 }
0x1f68   :  { %2202 = vtanh.f32 %v1667_v1 }
0x1f71   :  { %v2201_v49 = vpop.eup %2200 }
0x1f72   :  { %1681 = vrot.lane.b32.xlu0 %v2201_v49, %s2219_s4  ;;  %v2203_v51 = vpop.eup %2202  ;;  %v1672_v34 = vmul.f32 0.5, %v2201_v49 }
0x1f73   :  { %v1671_v54 = vmul.f32 0.5, %v2203_v51 }
0x1f74   :  { %v1674_v15 = vadd.f32 0.5, %v1672_v34  ;;  %v2013_v34 = vld [vmem:[%s3017_s9] ss:$0 sm:$0xff] }
0x1f75   :  { %v1673_v57 = vadd.f32 0.5, %v1671_v54 }
0x1f77   :  { %v1679_v61 = vmul.f32 %v1677_v33, %v1673_v57 }
0x1fe4   :  { %v1682_v22 = vpop.permute.xlu0 %1681 }
0x1fe5   :  { %v1684_v16 = vmul.f32 %v1682_v22, %v1673_v57 }
0x1fe7   :  { %1686 = vrot.lane.b32.xlu0 %v1684_v16, %s2219_s4  ;;  %v2121_v16 = vld [vmem:[%s3016_s8 + $0x18] sm:$0xff]  }
0x2059   :  { %v1687_v0 = vpop.permute.xlu0 %1686 }
0x205a   :  { %v1689_v25 = vadd.f32 %v1687_v0, %v1679_v61 }
0x205c   :  { %2204 = vtanh.f32 %v1689_v25  ;;  %1700 = vrot.lane.b32.xlu0 %v1689_v25, %s2219_s4 }
0x2066   :  { %v2205_v35 = vpop.eup %2204 }
0x2067   :  { %1692 = vrot.lane.b32.xlu1 %v2205_v35, %s2219_s4 }
0x20ce   :  { %v1701_v29 = vpop.permute.xlu0 %1700 }
0x20cf   :  { %v1703_v40 = vsel %vm748_vm7, %v1701_v29, %v1619_v11 }
0x20d0   :  { %1760 = vrot.lane.b32.xlu0 %v1703_v40, %s2219_s4 }
0x20d9   :  { %v1693_v36 = vpop.permute.xlu1 %1692 }
0x20da   :  { %v1695_v18 = vmul.f32 %v1693_v36, %v1674_v15 }
0x20dc   :  { %v1698_v50 = vsel %vm748_vm7, %v1695_v18, %v1614_v17 }
0x20dd   :  { %v1706_v41 = vpack.c.bf16 %v1698_v50, %v1698_v50 }
0x20df   :  { %2011 = vmatmul.mubr.msk.bf16.vlgmr.msra.gmra.mrb[36].mxu1 %vm252_vm2, %v1706_v41 }
0x20e0   :  { %2025 = vmatpush3.bf16.msra.mxu1 %v2118_v43  ;;  %2032 = vmatprep.mubr.msk.bf16.mxu1 %vm2221_vm9, %v2220_v21 }
0x20e1   :  { %2026 = vmatprep.subr.bf16.mxu1 %v2220_v21 }
0x20e4   :  { %2027 = vmatpush3.bf16.msra.mxu1 %v2119_v44 }
0x20e5   :  { %2028 = vmatprep.subr.bf16.mxu1 %v2220_v21 }
0x20e8   :  { %2029 = vmatpush3.bf16.msra.mxu1 %v2120_v5 }
0x20e9   :  { %2030 = vmatprep.subr.bf16.mxu1 %v2220_v21 }
0x20ec   :  { %2031 = vmatpush3.bf16.msra.mxu1 %v2121_v16 }
0x2142   :  { %v1761_v7 = vpop.permute.xlu0 %1760 }
0x21b2   :  { %v1744_v27 = vpop.f32.mrb[36].mxu1 }
0x21b3   :  { %v1751_v52 = vadd.f32 %v1744_v27, %v1136_v42  ;;  %v1746_v56 = vpop.f32.mrb[37].mxu1 }
0x21b4   :  { %v1752_v12 = vadd.f32 %v1746_v56, %v1138_v55  ;;  %v1748_v23 = vpop.f32.mrb[38].mxu1 }
0x21b5   :  { %v1749_v32 = vpop.f32.mrb[39].mxu1 }
0x21b6   :  { %2206 = vtanh.f32 %v1752_v12 }
0x21b7   :  { %2208 = vtanh.f32 %v1751_v52 }
0x21c0   :  { %v2207_v62 = vpop.eup %2206 }
0x21c1   :  { %1765 = vrot.lane.b32.xlu1 %v2207_v62, %s2219_s4  ;;  %v2209_v4 = vpop.eup %2208  ;;  %v1756_v6 = vmul.f32 0.5, %v2207_v62 }
0x21c2   :  { %v1755_v13 = vmul.f32 0.5, %v2209_v4 }
0x21c3   :  { %v1758_v3 = vadd.f32 0.5, %v1756_v6 }
0x21c4   :  { %v1757_v30 = vadd.f32 0.5, %v1755_v13 }
0x21c6   :  { %v1763_v9 = vmul.f32 %v1761_v7, %v1757_v30 }
0x2233   :  { %v1766_v63 = vpop.permute.xlu1 %1765 }
0x2234   :  { %v1768_v59 = vmul.f32 %v1766_v63, %v1757_v30 }
0x2236   :  { %1770 = vrot.lane.b32.xlu1 %v1768_v59, %s2219_s4 }
0x22a8   :  { %v1771_v26 = vpop.permute.xlu1 %1770 }
0x22a9   :  { %v1773_v60 = vadd.f32 %v1771_v26, %v1763_v9 }
0x22ab   :  { %2210 = vtanh.f32 %v1773_v60  ;;  %1784 = vrot.lane.b32.xlu1 %v1773_v60, %s2219_s4 }
0x22b5   :  { %v2211_v58 = vpop.eup %2210 }
0x22b6   :  { %1776 = vrot.lane.b32.xlu0 %v2211_v58, %s2219_s4 }
0x231d   :  { %v1785_v53 = vpop.permute.xlu1 %1784 }
0x231e   :  { %v1787_v31 = vsel %vm833_vm8, %v1785_v53, %v1703_v40 }
0x231f   :  { %1844 = vrot.lane.b32.xlu1 %v1787_v31, %s2219_s4 }
0x2328   :  { %v1777_v8 = vpop.permute.xlu0 %1776 }
0x2329   :  { %v1779_v11 = vmul.f32 %v1777_v8, %v1758_v3 }
0x232b   :  { %v1782_v14 = vsel %vm833_vm8, %v1779_v11, %v1698_v50 }
0x232c   :  { %v1790_v47 = vpack.c.bf16 %v1782_v14, %v1782_v14 }
0x232e   :  { %2012 = vmatmul.mubr.msk.bf16.vlgmr.msra.gmra.mrb[52].mxu0 %vm252_vm2, %v1790_v47 }
0x2391   :  { %v1845_v51 = vpop.permute.xlu1 %1844 }
0x2401   :  { %v1828_v17 = vpop.f32.mrb[52].mxu0 }
0x2402   :  { %v1835_v20 = vadd.f32 %v1828_v17, %v1140_v38  ;;  %v1830_v46 = vpop.f32.mrb[53].mxu0 }
0x2403   :  { %v1836_v37 = vadd.f32 %v1830_v46, %v1142_v28  ;;  %v1832_v19 = vpop.f32.mrb[54].mxu0 }
0x2404   :  { %v1833_v1 = vpop.f32.mrb[55].mxu0 }
0x2405   :  { %2212 = vtanh.f32 %v1836_v37 }
0x2406   :  { %2214 = vtanh.f32 %v1835_v20 }
0x240f   :  { %v2213_v45 = vpop.eup %2212 }
0x2410   :  { %1849 = vrot.lane.b32.xlu0 %v2213_v45, %s2219_s4  ;;  %v2215_v2 = vpop.eup %2214  ;;  %v1840_v61 = vmul.f32 0.5, %v2213_v45 }
0x2411   :  { %v1839_v39 = vmul.f32 0.5, %v2215_v2 }
0x2412   :  { %v1842_v0 = vadd.f32 0.5, %v1840_v61 }
0x2413   :  { %v1841_v24 = vadd.f32 0.5, %v1839_v39 }
0x2415   :  { %v1847_v54 = vmul.f32 %v1845_v51, %v1841_v24 }
0x2482   :  { %v1850_v48 = vpop.permute.xlu0 %1849 }
0x2483   :  { %v1852_v49 = vmul.f32 %v1850_v48, %v1841_v24 }
0x2485   :  { %1854 = vrot.lane.b32.xlu0 %v1852_v49, %s2219_s4 }
0x24f7   :  { %v1855_v57 = vpop.permute.xlu0 %1854 }
0x24f8   :  { %v1857_v22 = vadd.f32 %v1855_v57, %v1847_v54 }
0x24fa   :  { %2216 = vtanh.f32 %v1857_v22 }
0x2504   :  { %v2217_v33 = vpop.eup %2216 }
0x2505   :  { %1860 = vrot.lane.b32.xlu1 %v2217_v33, %s2219_s4 }
0x2577   :  { %v1861_v25 = vpop.permute.xlu1 %1860 }
0x2578   :  { %v1863_v35 = vmul.f32 %v1861_v25, %v1842_v0 }
0x257a   :  { %v1866_v29 = vsel %vm1865_vm10, %v1863_v35, %v1782_v14 }
0x257b   :  { %v1867_v40 = vpack.c.bf16 %v1866_v29, %v1866_v29 }
0x257d   :  { %2033 = vmatmul.mubr.msk.bf16.vlgmr.msra.gmra.mrb[40].mxu1 %vm252_vm2, %v1867_v40 }
0x2650   :  { %v1944_v15 = vpop.f32.mrb[40].mxu1 }
0x2651   :  { %v1945_v36 = vadd.f32 %v2013_v34, %v1944_v15  ;;  %v2034_v18 = vpop.f32.mrb[41].mxu1 }
0x2652   :  { %v1947_v50 = vpop.f32.mrb[42].mxu1 }
0x2653   :  { %1950 = vst [vmem:[%s3018_s10] sm:$0xff] %v1945_v36  ;;  %v2035_v41 = vpop.f32.mrb[43].mxu1 }

</bundles_post_ra>
